<compile_context>
chip_gen: v7x
topology: tpu7x:2x2x1
jax: 0.10.0
libtpu: 0.0.40
codegen_flags: <defaults>
</compile_context>

<pallas_src>
import jax
import jax.numpy as jnp
from jax.experimental import pallas as pl
from jax.experimental.pallas import tpu as pltpu


# ----------------------------------------------------------------------------
# The single fused forward kernel.
# ----------------------------------------------------------------------------
def _build_fused_kernel(*, B, K, H, T, num_layer, Lc1, Lp1, Lc2):
    """Build the fused forward kernel, closed over all static shape params."""

    def kernel(*refs):
        # ---- unpack refs: inputs, output, scratch (positional order) ----
        (x_ref, w1_ref, sc1_ref, sh1_ref, w2_ref, sc2_ref, sh2_ref,
         h0_ref, c0_ref,
         fw1_ref, fb1_ref, fw2_ref, fb2_ref, fw3_ref, fb3_ref) = refs[:15]
        lw = refs[15:15 + 3 * num_layer]          # [wih, whh, b] per layer
        o_ref = refs[15 + 3 * num_layer]
        cbuf1, cbuf2, gx_ref, hseq_ref = refs[16 + 3 * num_layer:]

        cout1 = w1_ref.shape[2]
        cout2 = w2_ref.shape[2]

        wih0 = lw[0][...]                         # (cout2, 4H)
        b0 = lw[2][...]                           # (1, 4H) = b_ih + b_hh

        # ------------------------------------------------------------------
        # Conv1+BN+ReLU+Pool, Conv2+BN+ReLU+Pool and the hoisted layer-0 LSTM
        # input projection, statically unrolled over the (tiny) batch.  Conv
        # is computed as K shifted matmuls (K*B pushes total -- negligible).
        # ------------------------------------------------------------------
        for b in range(B):
            xb = x_ref[b]                                         # (Lin, Cin)
            acc1 = jnp.dot(xb[0:Lc1, :], w1_ref[0],
                           preferred_element_type=jnp.float32)
            for k in range(1, K):
                acc1 = acc1 + jnp.dot(xb[k:k + Lc1, :], w1_ref[k],
                                      preferred_element_type=jnp.float32)
            # eval-mode BN (+conv bias) folded into scale/shift, then ReLU
            cbuf1[0:Lc1, :] = jnp.maximum(
                acc1 * sc1_ref[...] + sh1_ref[...], 0.0)          # (Lc1, 16)
            # max-pool k=3 s=3: elementwise max of the three stride-3 phases
            p1 = jnp.maximum(
                jnp.maximum(cbuf1[pl.ds(0, Lp1, stride=3), :],
                            cbuf1[pl.ds(1, Lp1, stride=3), :]),
                cbuf1[pl.ds(2, Lp1, stride=3), :])                # (Lp1, 16)

            acc2 = jnp.dot(p1[0:Lc2, :], w2_ref[0],
                           preferred_element_type=jnp.float32)
            for k in range(1, K):
                acc2 = acc2 + jnp.dot(p1[k:k + Lc2, :], w2_ref[k],
                                      preferred_element_type=jnp.float32)
            cbuf2[0:Lc2, :] = jnp.maximum(
                acc2 * sc2_ref[...] + sh2_ref[...], 0.0)          # (Lc2, 32)
            # remainder rows (Lc2 % 3) are dropped, matching PyTorch MaxPool1d
            p2 = jnp.maximum(
                jnp.maximum(cbuf2[pl.ds(0, T, stride=3), :],
                            cbuf2[pl.ds(1, T, stride=3), :]),
                cbuf2[pl.ds(2, T, stride=3), :])                  # (T, 32)

            # hoisted layer-0 input projection (+ bias) -- off the serial chain
            gx_ref[b] = jnp.dot(p2, wih0,
                                preferred_element_type=jnp.float32) + b0

        # ------------------------------------------------------------------
        # LSTM layers (PyTorch gate order i, f, g, o).  Per step only h@W_hh
        # sits on the recurrent critical path; x projections are pre-computed.
        # ------------------------------------------------------------------
        h = None
        for l in range(num_layer):
            whh = lw[3 * l + 1][...]                              # (H, 4H)
            if l > 0:
                wih = lw[3 * l + 0][...]
                bias = lw[3 * l + 2][...]
                for b in range(B):      # hoisted input projection for layer l
                    gx_ref[b] = jnp.dot(hseq_ref[b], wih,
                                        preferred_element_type=jnp.float32) + bias
            h = h0_ref[l]                                         # (B, H)
            c = c0_ref[l]
            for t in range(T):                                    # serial recurrence
                gates = gx_ref[:, t, :] + jnp.dot(
                    h, whh, preferred_element_type=jnp.float32)   # (B, 4H)
                i_g = jax.nn.sigmoid(gates[:, 0 * H:1 * H])
                f_g = jax.nn.sigmoid(gates[:, 1 * H:2 * H])
                g_g = jnp.tanh(gates[:, 2 * H:3 * H])
                o_g = jax.nn.sigmoid(gates[:, 3 * H:4 * H])
                c = f_g * c + i_g * g_g
                h = o_g * jnp.tanh(c)
                if l < num_layer - 1:
                    hseq_ref[:, t, :] = h       # sequence feeds the next layer
            # nn.LSTM inter-layer dropout(0.2) is train-only -> identity here.

        # ------------------------------------------------------------------
        # fc head on the last timestep of the last layer (dropouts = identity).
        # Final (B, num_classes) block is the only HBM write of the kernel.
        # ------------------------------------------------------------------
        z = jnp.maximum(jnp.dot(h, fw1_ref[...],
                                preferred_element_type=jnp.float32)
                        + fb1_ref[...], 0.0)
        z = jnp.maximum(jnp.dot(z, fw2_ref[...],
                                preferred_element_type=jnp.float32)
                        + fb2_ref[...], 0.0)
        o_ref[...] = (jnp.dot(z, fw3_ref[...],
                              preferred_element_type=jnp.float32)
                      + fb3_ref[...])

    return kernel


def lstm1dcnn_forward(params, x, h0, c0):
    """x: (B, L, input_size) f32; h0/c0: (D*num_layer, B, hidden_size1) f32."""
    B, Lin, _ = x.shape
    K, _, cout1 = params["w1"].shape
    cout2 = params["w2"].shape[2]
    num_layer = len(params["lstm"])
    H = params["lstm"][0]["whh"].shape[0]
    num_classes = params["fc"]["w3"].shape[1]

    Lc1 = Lin - K + 1           # conv1 output length
    Lp1 = Lc1 // 3              # pool1 output length
    Lc2 = Lp1 - K + 1           # conv2 output length
    T = Lc2 // 3                # pool2 output length = LSTM sequence length

    kernel = _build_fused_kernel(B=B, K=K, H=H, T=T, num_layer=num_layer,
                                 Lc1=Lc1, Lp1=Lp1, Lc2=Lc2)

    fc = params["fc"]
    inputs = [x,
              params["w1"], params["scale1"], params["shift1"],
              params["w2"], params["scale2"], params["shift2"],
              h0, c0,
              fc["w1"], fc["b1"], fc["w2"], fc["b2"], fc["w3"], fc["b3"]]
    for lp in params["lstm"]:
        inputs += [lp["wih"], lp["whh"], lp["b"]]

    # Single launch, no grid: all operands/outputs are whole-array VMEM blocks
    # (total resident footprint is a few tens of KB).
    return pl.pallas_call(
        kernel,
        out_shape=jax.ShapeDtypeStruct((B, num_classes), jnp.float32),
        scratch_shapes=[
            # +2 rows of slack so the stride-3 phase reads are trivially in bounds
            pltpu.VMEM((Lc1 + 2, cout1), jnp.float32),   # conv1 pre-pool buffer
            pltpu.VMEM((Lc2 + 2, cout2), jnp.float32),   # conv2 pre-pool buffer
            pltpu.VMEM((B, T, 4 * H), jnp.float32),      # hoisted gate projections
            pltpu.VMEM((B, T, H), jnp.float32),          # previous layer's h sequence
        ],
    )(*inputs)


# ----------------------------------------------------------------------------
# Parameter setup (deterministic, shapes match the nn.Module's __init__)
# ----------------------------------------------------------------------------
def init_params(key, input_size, hidden_size1, num_layer, num_classes, D):
    keys = jax.random.split(key, 16)

    def nrm(k, shape, scale=0.1):
        return (scale * jax.random.normal(k, shape)).astype(jnp.float32)

    eps = 1e-5
    p = {}

    # conv1 (16, Cin, 3) + bias, bn1(16)  -> folded eval-mode scale/shift
    w1 = nrm(keys[0], (16, input_size, 3)); cb1 = nrm(keys[1], (16,))
    g1 = 1.0 + nrm(keys[2], (16,)); beta1 = nrm(keys[3], (16,))
    m1 = nrm(keys[4], (16,)); v1 = 1.0 + jnp.abs(nrm(keys[5], (16,)))
    s1 = g1 / jnp.sqrt(v1 + eps)
    p["w1"] = jnp.transpose(w1, (2, 1, 0))                 # (K, Cin, Cout)
    p["scale1"] = s1[None, :]
    p["shift1"] = (beta1 - m1 * s1 + cb1 * s1)[None, :]

    # conv2 (32, 16, 3) + bias, bn2(32)
    w2 = nrm(keys[6], (32, 16, 3)); cb2 = nrm(keys[7], (32,))
    g2 = 1.0 + nrm(keys[8], (32,)); beta2 = nrm(keys[9], (32,))
    m2 = nrm(keys[10], (32,)); v2 = 1.0 + jnp.abs(nrm(keys[11], (32,)))
    s2 = g2 / jnp.sqrt(v2 + eps)
    p["w2"] = jnp.transpose(w2, (2, 1, 0))
    p["scale2"] = s2[None, :]
    p["shift2"] = (beta2 - m2 * s2 + cb2 * s2)[None, :]

    # LSTM: weight_ih (4H, in), weight_hh (4H, H), biases (4H,) -- transposed,
    # with b = b_ih + b_hh (PyTorch gate order i, f, g, o preserved).
    H = hidden_size1
    lstm = []
    lk = jax.random.split(keys[12], num_layer * 4)
    for l in range(num_layer):
        in_dim = 32 if l == 0 else H
        wih = nrm(lk[4 * l + 0], (4 * H, in_dim))
        whh = nrm(lk[4 * l + 1], (4 * H, H))
        bih = nrm(lk[4 * l + 2], (4 * H,))
        bhh = nrm(lk[4 * l + 3], (4 * H,))
        lstm.append(dict(wih=wih.T, whh=whh.T, b=(bih + bhh)[None, :]))
    p["lstm"] = lstm

    # fc head: (D*H -> 16 -> 8 -> num_classes)
    fk = jax.random.split(keys[13], 6)
    wf1 = nrm(fk[0], (16, D * H)); bf1 = nrm(fk[1], (16,))
    wf2 = nrm(fk[2], (8, 16));     bf2 = nrm(fk[3], (8,))
    wf3 = nrm(fk[4], (num_classes, 8)); bf3 = nrm(fk[5], (num_classes,))
    p["fc"] = dict(w1=wf1.T, b1=bf1[None, :], w2=wf2.T, b2=bf2[None, :],
                   w3=wf3.T, b3=bf3[None, :])
    return p


if __name__ == "__main__":
    key = jax.random.PRNGKey(0)
    k_param, k_x, k_h, k_c = jax.random.split(key, 4)

    # Small shapes consistent with the module:
    # L=50 -> conv1:48 -> pool1:16 -> conv2:14 -> pool2:4 timesteps into the LSTM.
    B, L, input_size = 2, 50, 4
    hidden_size1, num_layer, num_classes, D = 32, 2, 3, 1

    params = init_params(k_param, input_size, hidden_size1, num_layer,
                         num_classes, D)

    x = jax.random.normal(k_x, (B, L, input_size), jnp.float32)
    # Original uses torch.randn per forward; here deterministic randn from key.
    h0 = jax.random.normal(k_h, (D * num_layer, B, hidden_size1), jnp.float32)
    c0 = jax.random.normal(k_c, (D * num_layer, B, hidden_size1), jnp.float32)

    out = lstm1dcnn_forward(params, x, h0, c0)
    out = jax.block_until_ready(out)
    assert out.shape == (B, num_classes) and out.dtype == jnp.float32
    print("KERNEL_OK")
</pallas_src>

<mosaic_0001>
module attributes {stable_mosaic.version = 11 : i64} {
  func.func @kernel(%arg0: memref<2x50x4xf32, #tpu.memory_space<vmem>>, %arg1: memref<3x4x16xf32, #tpu.memory_space<vmem>>, %arg2: memref<1x16xf32, #tpu.memory_space<vmem>>, %arg3: memref<1x16xf32, #tpu.memory_space<vmem>>, %arg4: memref<3x16x32xf32, #tpu.memory_space<vmem>>, %arg5: memref<1x32xf32, #tpu.memory_space<vmem>>, %arg6: memref<1x32xf32, #tpu.memory_space<vmem>>, %arg7: memref<2x2x32xf32, #tpu.memory_space<vmem>>, %arg8: memref<2x2x32xf32, #tpu.memory_space<vmem>>, %arg9: memref<32x16xf32, #tpu.memory_space<vmem>>, %arg10: memref<1x16xf32, #tpu.memory_space<vmem>>, %arg11: memref<16x8xf32, #tpu.memory_space<vmem>>, %arg12: memref<1x8xf32, #tpu.memory_space<vmem>>, %arg13: memref<8x3xf32, #tpu.memory_space<vmem>>, %arg14: memref<1x3xf32, #tpu.memory_space<vmem>>, %arg15: memref<32x128xf32, #tpu.memory_space<vmem>>, %arg16: memref<32x128xf32, #tpu.memory_space<vmem>>, %arg17: memref<1x128xf32, #tpu.memory_space<vmem>>, %arg18: memref<32x128xf32, #tpu.memory_space<vmem>>, %arg19: memref<32x128xf32, #tpu.memory_space<vmem>>, %arg20: memref<1x128xf32, #tpu.memory_space<vmem>>, %arg21: memref<2x3xf32, #tpu.memory_space<vmem>>, %arg22: memref<50x16xf32, #tpu.memory_space<vmem>>, %arg23: memref<16x32xf32, #tpu.memory_space<vmem>>, %arg24: memref<2x4x128xf32, #tpu.memory_space<vmem>>, %arg25: memref<2x4x32xf32, #tpu.memory_space<vmem>>) attributes {dimension_semantics = [], scalar_prefetch = 0 : i64, scratch_operands = 4 : i64, tpu.core_type = #tpu.core_type<tc>} {
    %c0 = arith.constant 0 : index
    %c0_0 = arith.constant 0 : index
    %0 = vector.load %arg15[%c0, %c0_0] : memref<32x128xf32, #tpu.memory_space<vmem>>, vector<32x128xf32>
    %c0_1 = arith.constant 0 : index
    %c0_2 = arith.constant 0 : index
    %1 = vector.load %arg17[%c0_1, %c0_2] : memref<1x128xf32, #tpu.memory_space<vmem>>, vector<1x128xf32>
    %c0_3 = arith.constant 0 : index
    %c0_4 = arith.constant 0 : index
    %c0_5 = arith.constant 0 : index
    %2 = vector.load %arg0[%c0_3, %c0_4, %c0_5] : memref<2x50x4xf32, #tpu.memory_space<vmem>>, vector<1x50x4xf32>
    %3 = vector.shape_cast %2 : vector<1x50x4xf32> to vector<50x4xf32>
    %4 = vector.extract_strided_slice %3 {offsets = [0, 0], sizes = [48, 4], strides = [1, 1]} : vector<50x4xf32> to vector<48x4xf32>
    %c0_6 = arith.constant 0 : index
    %c0_7 = arith.constant 0 : index
    %c0_8 = arith.constant 0 : index
    %5 = vector.load %arg1[%c0_6, %c0_7, %c0_8] : memref<3x4x16xf32, #tpu.memory_space<vmem>>, vector<1x4x16xf32>
    %6 = vector.shape_cast %5 : vector<1x4x16xf32> to vector<4x16xf32>
    %cst = arith.constant dense<0.000000e+00> : vector<48x16xf32>
    %7 = tpu.matmul %4, %6, %cst {dimension_numbers = #tpu.dot_dimension_numbers<[1], [0], [0], [1], [0, 0, 1, 1], [], []>} : vector<48x4xf32>, vector<4x16xf32>, vector<48x16xf32> -> vector<48x16xf32>
    %8 = vector.extract_strided_slice %3 {offsets = [1, 0], sizes = [48, 4], strides = [1, 1]} : vector<50x4xf32> to vector<48x4xf32>
    %c1 = arith.constant 1 : index
    %c0_9 = arith.constant 0 : index
    %c0_10 = arith.constant 0 : index
    %9 = vector.load %arg1[%c1, %c0_9, %c0_10] : memref<3x4x16xf32, #tpu.memory_space<vmem>>, vector<1x4x16xf32>
    %10 = vector.shape_cast %9 : vector<1x4x16xf32> to vector<4x16xf32>
    %cst_11 = arith.constant dense<0.000000e+00> : vector<48x16xf32>
    %11 = tpu.matmul %8, %10, %cst_11 {dimension_numbers = #tpu.dot_dimension_numbers<[1], [0], [0], [1], [0, 0, 1, 1], [], []>} : vector<48x4xf32>, vector<4x16xf32>, vector<48x16xf32> -> vector<48x16xf32>
    %12 = arith.addf %7, %11 : vector<48x16xf32>
    %13 = vector.extract_strided_slice %3 {offsets = [2, 0], sizes = [48, 4], strides = [1, 1]} : vector<50x4xf32> to vector<48x4xf32>
    %c2 = arith.constant 2 : index
    %c0_12 = arith.constant 0 : index
    %c0_13 = arith.constant 0 : index
    %14 = vector.load %arg1[%c2, %c0_12, %c0_13] : memref<3x4x16xf32, #tpu.memory_space<vmem>>, vector<1x4x16xf32>
    %15 = vector.shape_cast %14 : vector<1x4x16xf32> to vector<4x16xf32>
    %cst_14 = arith.constant dense<0.000000e+00> : vector<48x16xf32>
    %16 = tpu.matmul %13, %15, %cst_14 {dimension_numbers = #tpu.dot_dimension_numbers<[1], [0], [0], [1], [0, 0, 1, 1], [], []>} : vector<48x4xf32>, vector<4x16xf32>, vector<48x16xf32> -> vector<48x16xf32>
    %17 = arith.addf %12, %16 : vector<48x16xf32>
    %c0_15 = arith.constant 0 : index
    %c0_16 = arith.constant 0 : index
    %18 = vector.load %arg2[%c0_15, %c0_16] : memref<1x16xf32, #tpu.memory_space<vmem>>, vector<1x16xf32>
    %19 = vector.broadcast %18 : vector<1x16xf32> to vector<48x16xf32>
    %20 = arith.mulf %17, %19 : vector<48x16xf32>
    %c0_17 = arith.constant 0 : index
    %c0_18 = arith.constant 0 : index
    %21 = vector.load %arg3[%c0_17, %c0_18] : memref<1x16xf32, #tpu.memory_space<vmem>>, vector<1x16xf32>
    %22 = vector.broadcast %21 : vector<1x16xf32> to vector<48x16xf32>
    %23 = arith.addf %20, %22 : vector<48x16xf32>
    %cst_19 = arith.constant 0.000000e+00 : f32
    %24 = vector.broadcast %cst_19 : f32 to vector<48x16xf32>
    %25 = arith.maximumf %23, %24 : vector<48x16xf32>
    %c0_20 = arith.constant 0 : index
    %c0_21 = arith.constant 0 : index
    %26 = vector.load %arg22[%c0_20, %c0_21] : memref<50x16xf32, #tpu.memory_space<vmem>>, vector<48x16xf32>
    tpu.vector_store %arg22[%c0_20, %c0_21], %25 {strides = array<i32>} : memref<50x16xf32, #tpu.memory_space<vmem>>, vector<48x16xf32>,
    %c0_22 = arith.constant 0 : index
    %c0_23 = arith.constant 0 : index
    %27 = tpu.strided_load %arg22[%c0_22, %c0_23] {strides = array<i32: 3, 1>} : memref<50x16xf32, #tpu.memory_space<vmem>>, vector<16x16xf32>
    %c1_24 = arith.constant 1 : index
    %c0_25 = arith.constant 0 : index
    %28 = tpu.strided_load %arg22[%c1_24, %c0_25] {strides = array<i32: 3, 1>} : memref<50x16xf32, #tpu.memory_space<vmem>>, vector<16x16xf32>
    %29 = arith.maximumf %27, %28 : vector<16x16xf32>
    %c2_26 = arith.constant 2 : index
    %c0_27 = arith.constant 0 : index
    %30 = tpu.strided_load %arg22[%c2_26, %c0_27] {strides = array<i32: 3, 1>} : memref<50x16xf32, #tpu.memory_space<vmem>>, vector<16x16xf32>
    %31 = arith.maximumf %29, %30 : vector<16x16xf32>
    %32 = vector.extract_strided_slice %31 {offsets = [0, 0], sizes = [14, 16], strides = [1, 1]} : vector<16x16xf32> to vector<14x16xf32>
    %c0_28 = arith.constant 0 : index
    %c0_29 = arith.constant 0 : index
    %c0_30 = arith.constant 0 : index
    %33 = vector.load %arg4[%c0_28, %c0_29, %c0_30] : memref<3x16x32xf32, #tpu.memory_space<vmem>>, vector<1x16x32xf32>
    %34 = vector.shape_cast %33 : vector<1x16x32xf32> to vector<16x32xf32>
    %cst_31 = arith.constant dense<0.000000e+00> : vector<14x32xf32>
    %35 = tpu.matmul %32, %34, %cst_31 {dimension_numbers = #tpu.dot_dimension_numbers<[1], [0], [0], [1], [0, 0, 1, 1], [], []>} : vector<14x16xf32>, vector<16x32xf32>, vector<14x32xf32> -> vector<14x32xf32>
    %36 = vector.extract_strided_slice %31 {offsets = [1, 0], sizes = [14, 16], strides = [1, 1]} : vector<16x16xf32> to vector<14x16xf32>
    %c1_32 = arith.constant 1 : index
    %c0_33 = arith.constant 0 : index
    %c0_34 = arith.constant 0 : index
    %37 = vector.load %arg4[%c1_32, %c0_33, %c0_34] : memref<3x16x32xf32, #tpu.memory_space<vmem>>, vector<1x16x32xf32>
    %38 = vector.shape_cast %37 : vector<1x16x32xf32> to vector<16x32xf32>
    %cst_35 = arith.constant dense<0.000000e+00> : vector<14x32xf32>
    %39 = tpu.matmul %36, %38, %cst_35 {dimension_numbers = #tpu.dot_dimension_numbers<[1], [0], [0], [1], [0, 0, 1, 1], [], []>} : vector<14x16xf32>, vector<16x32xf32>, vector<14x32xf32> -> vector<14x32xf32>
    %40 = arith.addf %35, %39 : vector<14x32xf32>
    %41 = vector.extract_strided_slice %31 {offsets = [2, 0], sizes = [14, 16], strides = [1, 1]} : vector<16x16xf32> to vector<14x16xf32>
    %c2_36 = arith.constant 2 : index
    %c0_37 = arith.constant 0 : index
    %c0_38 = arith.constant 0 : index
    %42 = vector.load %arg4[%c2_36, %c0_37, %c0_38] : memref<3x16x32xf32, #tpu.memory_space<vmem>>, vector<1x16x32xf32>
    %43 = vector.shape_cast %42 : vector<1x16x32xf32> to vector<16x32xf32>
    %cst_39 = arith.constant dense<0.000000e+00> : vector<14x32xf32>
    %44 = tpu.matmul %41, %43, %cst_39 {dimension_numbers = #tpu.dot_dimension_numbers<[1], [0], [0], [1], [0, 0, 1, 1], [], []>} : vector<14x16xf32>, vector<16x32xf32>, vector<14x32xf32> -> vector<14x32xf32>
    %45 = arith.addf %40, %44 : vector<14x32xf32>
    %c0_40 = arith.constant 0 : index
    %c0_41 = arith.constant 0 : index
    %46 = vector.load %arg5[%c0_40, %c0_41] : memref<1x32xf32, #tpu.memory_space<vmem>>, vector<1x32xf32>
    %47 = vector.broadcast %46 : vector<1x32xf32> to vector<14x32xf32>
    %48 = arith.mulf %45, %47 : vector<14x32xf32>
    %c0_42 = arith.constant 0 : index
    %c0_43 = arith.constant 0 : index
    %49 = vector.load %arg6[%c0_42, %c0_43] : memref<1x32xf32, #tpu.memory_space<vmem>>, vector<1x32xf32>
    %50 = vector.broadcast %49 : vector<1x32xf32> to vector<14x32xf32>
    %51 = arith.addf %48, %50 : vector<14x32xf32>
    %cst_44 = arith.constant 0.000000e+00 : f32
    %52 = vector.broadcast %cst_44 : f32 to vector<14x32xf32>
    %53 = arith.maximumf %51, %52 : vector<14x32xf32>
    %c0_45 = arith.constant 0 : index
    %c0_46 = arith.constant 0 : index
    %54 = vector.load %arg23[%c0_45, %c0_46] : memref<16x32xf32, #tpu.memory_space<vmem>>, vector<14x32xf32>
    tpu.vector_store %arg23[%c0_45, %c0_46], %53 {strides = array<i32>} : memref<16x32xf32, #tpu.memory_space<vmem>>, vector<14x32xf32>,
    %c0_47 = arith.constant 0 : index
    %c0_48 = arith.constant 0 : index
    %55 = tpu.strided_load %arg23[%c0_47, %c0_48] {strides = array<i32: 3, 1>} : memref<16x32xf32, #tpu.memory_space<vmem>>, vector<4x32xf32>
    %c1_49 = arith.constant 1 : index
    %c0_50 = arith.constant 0 : index
    %56 = tpu.strided_load %arg23[%c1_49, %c0_50] {strides = array<i32: 3, 1>} : memref<16x32xf32, #tpu.memory_space<vmem>>, vector<4x32xf32>
    %57 = arith.maximumf %55, %56 : vector<4x32xf32>
    %c2_51 = arith.constant 2 : index
    %c0_52 = arith.constant 0 : index
    %58 = tpu.strided_load %arg23[%c2_51, %c0_52] {strides = array<i32: 3, 1>} : memref<16x32xf32, #tpu.memory_space<vmem>>, vector<4x32xf32>
    %59 = arith.maximumf %57, %58 : vector<4x32xf32>
    %cst_53 = arith.constant dense<0.000000e+00> : vector<4x128xf32>
    %60 = tpu.matmul %59, %0, %cst_53 {dimension_numbers = #tpu.dot_dimension_numbers<[1], [0], [0], [1], [0, 0, 1, 1], [], []>} : vector<4x32xf32>, vector<32x128xf32>, vector<4x128xf32> -> vector<4x128xf32>
    %61 = vector.broadcast %1 : vector<1x128xf32> to vector<4x128xf32>
    %62 = arith.addf %60, %61 : vector<4x128xf32>
    %c0_54 = arith.constant 0 : index
    %c0_55 = arith.constant 0 : index
    %c0_56 = arith.constant 0 : index
    %63 = vector.load %arg24[%c0_54, %c0_55, %c0_56] : memref<2x4x128xf32, #tpu.memory_space<vmem>>, vector<1x4x128xf32>
    %64 = vector.shape_cast %63 : vector<1x4x128xf32> to vector<4x128xf32>
    %65 = vector.shape_cast %62 : vector<4x128xf32> to vector<1x4x128xf32>
    tpu.vector_store %arg24[%c0_54, %c0_55, %c0_56], %65 {strides = array<i32>} : memref<2x4x128xf32, #tpu.memory_space<vmem>>, vector<1x4x128xf32>,
    %c1_57 = arith.constant 1 : index
    %c0_58 = arith.constant 0 : index
    %c0_59 = arith.constant 0 : index
    %66 = vector.load %arg0[%c1_57, %c0_58, %c0_59] : memref<2x50x4xf32, #tpu.memory_space<vmem>>, vector<1x50x4xf32>
    %67 = vector.shape_cast %66 : vector<1x50x4xf32> to vector<50x4xf32>
    %68 = vector.extract_strided_slice %67 {offsets = [0, 0], sizes = [48, 4], strides = [1, 1]} : vector<50x4xf32> to vector<48x4xf32>
    %c0_60 = arith.constant 0 : index
    %c0_61 = arith.constant 0 : index
    %c0_62 = arith.constant 0 : index
    %69 = vector.load %arg1[%c0_60, %c0_61, %c0_62] : memref<3x4x16xf32, #tpu.memory_space<vmem>>, vector<1x4x16xf32>
    %70 = vector.shape_cast %69 : vector<1x4x16xf32> to vector<4x16xf32>
    %cst_63 = arith.constant dense<0.000000e+00> : vector<48x16xf32>
    %71 = tpu.matmul %68, %70, %cst_63 {dimension_numbers = #tpu.dot_dimension_numbers<[1], [0], [0], [1], [0, 0, 1, 1], [], []>} : vector<48x4xf32>, vector<4x16xf32>, vector<48x16xf32> -> vector<48x16xf32>
    %72 = vector.extract_strided_slice %67 {offsets = [1, 0], sizes = [48, 4], strides = [1, 1]} : vector<50x4xf32> to vector<48x4xf32>
    %c1_64 = arith.constant 1 : index
    %c0_65 = arith.constant 0 : index
    %c0_66 = arith.constant 0 : index
    %73 = vector.load %arg1[%c1_64, %c0_65, %c0_66] : memref<3x4x16xf32, #tpu.memory_space<vmem>>, vector<1x4x16xf32>
    %74 = vector.shape_cast %73 : vector<1x4x16xf32> to vector<4x16xf32>
    %cst_67 = arith.constant dense<0.000000e+00> : vector<48x16xf32>
    %75 = tpu.matmul %72, %74, %cst_67 {dimension_numbers = #tpu.dot_dimension_numbers<[1], [0], [0], [1], [0, 0, 1, 1], [], []>} : vector<48x4xf32>, vector<4x16xf32>, vector<48x16xf32> -> vector<48x16xf32>
    %76 = arith.addf %71, %75 : vector<48x16xf32>
    %77 = vector.extract_strided_slice %67 {offsets = [2, 0], sizes = [48, 4], strides = [1, 1]} : vector<50x4xf32> to vector<48x4xf32>
    %c2_68 = arith.constant 2 : index
    %c0_69 = arith.constant 0 : index
    %c0_70 = arith.constant 0 : index
    %78 = vector.load %arg1[%c2_68, %c0_69, %c0_70] : memref<3x4x16xf32, #tpu.memory_space<vmem>>, vector<1x4x16xf32>
    %79 = vector.shape_cast %78 : vector<1x4x16xf32> to vector<4x16xf32>
    %cst_71 = arith.constant dense<0.000000e+00> : vector<48x16xf32>
    %80 = tpu.matmul %77, %79, %cst_71 {dimension_numbers = #tpu.dot_dimension_numbers<[1], [0], [0], [1], [0, 0, 1, 1], [], []>} : vector<48x4xf32>, vector<4x16xf32>, vector<48x16xf32> -> vector<48x16xf32>
    %81 = arith.addf %76, %80 : vector<48x16xf32>
    %c0_72 = arith.constant 0 : index
    %c0_73 = arith.constant 0 : index
    %82 = vector.load %arg2[%c0_72, %c0_73] : memref<1x16xf32, #tpu.memory_space<vmem>>, vector<1x16xf32>
    %83 = vector.broadcast %82 : vector<1x16xf32> to vector<48x16xf32>
    %84 = arith.mulf %81, %83 : vector<48x16xf32>
    %c0_74 = arith.constant 0 : index
    %c0_75 = arith.constant 0 : index
    %85 = vector.load %arg3[%c0_74, %c0_75] : memref<1x16xf32, #tpu.memory_space<vmem>>, vector<1x16xf32>
    %86 = vector.broadcast %85 : vector<1x16xf32> to vector<48x16xf32>
    %87 = arith.addf %84, %86 : vector<48x16xf32>
    %cst_76 = arith.constant 0.000000e+00 : f32
    %88 = vector.broadcast %cst_76 : f32 to vector<48x16xf32>
    %89 = arith.maximumf %87, %88 : vector<48x16xf32>
    %c0_77 = arith.constant 0 : index
    %c0_78 = arith.constant 0 : index
    %90 = vector.load %arg22[%c0_77, %c0_78] : memref<50x16xf32, #tpu.memory_space<vmem>>, vector<48x16xf32>
    tpu.vector_store %arg22[%c0_77, %c0_78], %89 {strides = array<i32>} : memref<50x16xf32, #tpu.memory_space<vmem>>, vector<48x16xf32>,
    %c0_79 = arith.constant 0 : index
    %c0_80 = arith.constant 0 : index
    %91 = tpu.strided_load %arg22[%c0_79, %c0_80] {strides = array<i32: 3, 1>} : memref<50x16xf32, #tpu.memory_space<vmem>>, vector<16x16xf32>
    %c1_81 = arith.constant 1 : index
    %c0_82 = arith.constant 0 : index
    %92 = tpu.strided_load %arg22[%c1_81, %c0_82] {strides = array<i32: 3, 1>} : memref<50x16xf32, #tpu.memory_space<vmem>>, vector<16x16xf32>
    %93 = arith.maximumf %91, %92 : vector<16x16xf32>
    %c2_83 = arith.constant 2 : index
    %c0_84 = arith.constant 0 : index
    %94 = tpu.strided_load %arg22[%c2_83, %c0_84] {strides = array<i32: 3, 1>} : memref<50x16xf32, #tpu.memory_space<vmem>>, vector<16x16xf32>
    %95 = arith.maximumf %93, %94 : vector<16x16xf32>
    %96 = vector.extract_strided_slice %95 {offsets = [0, 0], sizes = [14, 16], strides = [1, 1]} : vector<16x16xf32> to vector<14x16xf32>
    %c0_85 = arith.constant 0 : index
    %c0_86 = arith.constant 0 : index
    %c0_87 = arith.constant 0 : index
    %97 = vector.load %arg4[%c0_85, %c0_86, %c0_87] : memref<3x16x32xf32, #tpu.memory_space<vmem>>, vector<1x16x32xf32>
    %98 = vector.shape_cast %97 : vector<1x16x32xf32> to vector<16x32xf32>
    %cst_88 = arith.constant dense<0.000000e+00> : vector<14x32xf32>
    %99 = tpu.matmul %96, %98, %cst_88 {dimension_numbers = #tpu.dot_dimension_numbers<[1], [0], [0], [1], [0, 0, 1, 1], [], []>} : vector<14x16xf32>, vector<16x32xf32>, vector<14x32xf32> -> vector<14x32xf32>
    %100 = vector.extract_strided_slice %95 {offsets = [1, 0], sizes = [14, 16], strides = [1, 1]} : vector<16x16xf32> to vector<14x16xf32>
    %c1_89 = arith.constant 1 : index
    %c0_90 = arith.constant 0 : index
    %c0_91 = arith.constant 0 : index
    %101 = vector.load %arg4[%c1_89, %c0_90, %c0_91] : memref<3x16x32xf32, #tpu.memory_space<vmem>>, vector<1x16x32xf32>
    %102 = vector.shape_cast %101 : vector<1x16x32xf32> to vector<16x32xf32>
    %cst_92 = arith.constant dense<0.000000e+00> : vector<14x32xf32>
    %103 = tpu.matmul %100, %102, %cst_92 {dimension_numbers = #tpu.dot_dimension_numbers<[1], [0], [0], [1], [0, 0, 1, 1], [], []>} : vector<14x16xf32>, vector<16x32xf32>, vector<14x32xf32> -> vector<14x32xf32>
    %104 = arith.addf %99, %103 : vector<14x32xf32>
    %105 = vector.extract_strided_slice %95 {offsets = [2, 0], sizes = [14, 16], strides = [1, 1]} : vector<16x16xf32> to vector<14x16xf32>
    %c2_93 = arith.constant 2 : index
    %c0_94 = arith.constant 0 : index
    %c0_95 = arith.constant 0 : index
    %106 = vector.load %arg4[%c2_93, %c0_94, %c0_95] : memref<3x16x32xf32, #tpu.memory_space<vmem>>, vector<1x16x32xf32>
    %107 = vector.shape_cast %106 : vector<1x16x32xf32> to vector<16x32xf32>
    %cst_96 = arith.constant dense<0.000000e+00> : vector<14x32xf32>
    %108 = tpu.matmul %105, %107, %cst_96 {dimension_numbers = #tpu.dot_dimension_numbers<[1], [0], [0], [1], [0, 0, 1, 1], [], []>} : vector<14x16xf32>, vector<16x32xf32>, vector<14x32xf32> -> vector<14x32xf32>
    %109 = arith.addf %104, %108 : vector<14x32xf32>
    %c0_97 = arith.constant 0 : index
    %c0_98 = arith.constant 0 : index
    %110 = vector.load %arg5[%c0_97, %c0_98] : memref<1x32xf32, #tpu.memory_space<vmem>>, vector<1x32xf32>
    %111 = vector.broadcast %110 : vector<1x32xf32> to vector<14x32xf32>
    %112 = arith.mulf %109, %111 : vector<14x32xf32>
    %c0_99 = arith.constant 0 : index
    %c0_100 = arith.constant 0 : index
    %113 = vector.load %arg6[%c0_99, %c0_100] : memref<1x32xf32, #tpu.memory_space<vmem>>, vector<1x32xf32>
    %114 = vector.broadcast %113 : vector<1x32xf32> to vector<14x32xf32>
    %115 = arith.addf %112, %114 : vector<14x32xf32>
    %cst_101 = arith.constant 0.000000e+00 : f32
    %116 = vector.broadcast %cst_101 : f32 to vector<14x32xf32>
    %117 = arith.maximumf %115, %116 : vector<14x32xf32>
    %c0_102 = arith.constant 0 : index
    %c0_103 = arith.constant 0 : index
    %118 = vector.load %arg23[%c0_102, %c0_103] : memref<16x32xf32, #tpu.memory_space<vmem>>, vector<14x32xf32>
    tpu.vector_store %arg23[%c0_102, %c0_103], %117 {strides = array<i32>} : memref<16x32xf32, #tpu.memory_space<vmem>>, vector<14x32xf32>,
    %c0_104 = arith.constant 0 : index
    %c0_105 = arith.constant 0 : index
    %119 = tpu.strided_load %arg23[%c0_104, %c0_105] {strides = array<i32: 3, 1>} : memref<16x32xf32, #tpu.memory_space<vmem>>, vector<4x32xf32>
    %c1_106 = arith.constant 1 : index
    %c0_107 = arith.constant 0 : index
    %120 = tpu.strided_load %arg23[%c1_106, %c0_107] {strides = array<i32: 3, 1>} : memref<16x32xf32, #tpu.memory_space<vmem>>, vector<4x32xf32>
    %121 = arith.maximumf %119, %120 : vector<4x32xf32>
    %c2_108 = arith.constant 2 : index
    %c0_109 = arith.constant 0 : index
    %122 = tpu.strided_load %arg23[%c2_108, %c0_109] {strides = array<i32: 3, 1>} : memref<16x32xf32, #tpu.memory_space<vmem>>, vector<4x32xf32>
    %123 = arith.maximumf %121, %122 : vector<4x32xf32>
    %cst_110 = arith.constant dense<0.000000e+00> : vector<4x128xf32>
    %124 = tpu.matmul %123, %0, %cst_110 {dimension_numbers = #tpu.dot_dimension_numbers<[1], [0], [0], [1], [0, 0, 1, 1], [], []>} : vector<4x32xf32>, vector<32x128xf32>, vector<4x128xf32> -> vector<4x128xf32>
    %125 = vector.broadcast %1 : vector<1x128xf32> to vector<4x128xf32>
    %126 = arith.addf %124, %125 : vector<4x128xf32>
    %c1_111 = arith.constant 1 : index
    %c0_112 = arith.constant 0 : index
    %c0_113 = arith.constant 0 : index
    %127 = vector.load %arg24[%c1_111, %c0_112, %c0_113] : memref<2x4x128xf32, #tpu.memory_space<vmem>>, vector<1x4x128xf32>
    %128 = vector.shape_cast %127 : vector<1x4x128xf32> to vector<4x128xf32>
    %129 = vector.shape_cast %126 : vector<4x128xf32> to vector<1x4x128xf32>
    tpu.vector_store %arg24[%c1_111, %c0_112, %c0_113], %129 {strides = array<i32>} : memref<2x4x128xf32, #tpu.memory_space<vmem>>, vector<1x4x128xf32>,
    %c0_114 = arith.constant 0 : index
    %c0_115 = arith.constant 0 : index
    %130 = vector.load %arg16[%c0_114, %c0_115] : memref<32x128xf32, #tpu.memory_space<vmem>>, vector<32x128xf32>
    %c0_116 = arith.constant 0 : index
    %c0_117 = arith.constant 0 : index
    %c0_118 = arith.constant 0 : index
    %131 = vector.load %arg7[%c0_116, %c0_117, %c0_118] : memref<2x2x32xf32, #tpu.memory_space<vmem>>, vector<1x2x32xf32>
    %132 = vector.shape_cast %131 : vector<1x2x32xf32> to vector<2x32xf32>
    %c0_119 = arith.constant 0 : index
    %c0_120 = arith.constant 0 : index
    %c0_121 = arith.constant 0 : index
    %133 = vector.load %arg8[%c0_119, %c0_120, %c0_121] : memref<2x2x32xf32, #tpu.memory_space<vmem>>, vector<1x2x32xf32>
    %134 = vector.shape_cast %133 : vector<1x2x32xf32> to vector<2x32xf32>
    %c0_122 = arith.constant 0 : index
    %c0_123 = arith.constant 0 : index
    %c0_124 = arith.constant 0 : index
    %135 = vector.load %arg24[%c0_122, %c0_123, %c0_124] : memref<2x4x128xf32, #tpu.memory_space<vmem>>, vector<2x1x128xf32>
    %136 = vector.shape_cast %135 : vector<2x1x128xf32> to vector<2x128xf32>
    %cst_125 = arith.constant dense<0.000000e+00> : vector<2x128xf32>
    %137 = tpu.matmul %132, %130, %cst_125 {dimension_numbers = #tpu.dot_dimension_numbers<[1], [0], [0], [1], [0, 0, 1, 1], [], []>} : vector<2x32xf32>, vector<32x128xf32>, vector<2x128xf32> -> vector<2x128xf32>
    %138 = arith.addf %136, %137 : vector<2x128xf32>
    %139 = vector.extract_strided_slice %138 {offsets = [0, 0], sizes = [2, 32], strides = [1, 1]} : vector<2x128xf32> to vector<2x32xf32>
    %140 = arith.negf %139 : vector<2x32xf32>
    %141 = math.exp %140 : vector<2x32xf32>
    %cst_126 = arith.constant 1.000000e+00 : f32
    %142 = vector.broadcast %cst_126 : f32 to vector<2x32xf32>
    %143 = arith.addf %142, %141 : vector<2x32xf32>
    %144 = arith.divf %142, %143 : vector<2x32xf32>
    %145 = vector.extract_strided_slice %138 {offsets = [0, 32], sizes = [2, 32], strides = [1, 1]} : vector<2x128xf32> to vector<2x32xf32>
    %146 = arith.negf %145 : vector<2x32xf32>
    %147 = math.exp %146 : vector<2x32xf32>
    %cst_127 = arith.constant 1.000000e+00 : f32
    %148 = vector.broadcast %cst_127 : f32 to vector<2x32xf32>
    %149 = arith.addf %148, %147 : vector<2x32xf32>
    %150 = arith.divf %148, %149 : vector<2x32xf32>
    %151 = vector.extract_strided_slice %138 {offsets = [0, 64], sizes = [2, 32], strides = [1, 1]} : vector<2x128xf32> to vector<2x32xf32>
    %152 = math.tanh %151 : vector<2x32xf32>
    %153 = vector.extract_strided_slice %138 {offsets = [0, 96], sizes = [2, 32], strides = [1, 1]} : vector<2x128xf32> to vector<2x32xf32>
    %154 = arith.negf %153 : vector<2x32xf32>
    %155 = math.exp %154 : vector<2x32xf32>
    %cst_128 = arith.constant 1.000000e+00 : f32
    %156 = vector.broadcast %cst_128 : f32 to vector<2x32xf32>
    %157 = arith.addf %156, %155 : vector<2x32xf32>
    %158 = arith.divf %156, %157 : vector<2x32xf32>
    %159 = arith.mulf %150, %134 : vector<2x32xf32>
    %160 = arith.mulf %144, %152 : vector<2x32xf32>
    %161 = arith.addf %159, %160 : vector<2x32xf32>
    %162 = math.tanh %161 : vector<2x32xf32>
    %163 = arith.mulf %158, %162 : vector<2x32xf32>
    %c0_129 = arith.constant 0 : index
    %c0_130 = arith.constant 0 : index
    %c0_131 = arith.constant 0 : index
    %164 = vector.load %arg25[%c0_129, %c0_130, %c0_131] : memref<2x4x32xf32, #tpu.memory_space<vmem>>, vector<2x1x32xf32>
    %165 = vector.shape_cast %164 : vector<2x1x32xf32> to vector<2x32xf32>
    %166 = vector.shape_cast %163 : vector<2x32xf32> to vector<2x1x32xf32>
    tpu.vector_store %arg25[%c0_129, %c0_130, %c0_131], %166 {strides = array<i32>} : memref<2x4x32xf32, #tpu.memory_space<vmem>>, vector<2x1x32xf32>,
    %c0_132 = arith.constant 0 : index
    %c1_133 = arith.constant 1 : index
    %c0_134 = arith.constant 0 : index
    %167 = vector.load %arg24[%c0_132, %c1_133, %c0_134] : memref<2x4x128xf32, #tpu.memory_space<vmem>>, vector<2x1x128xf32>
    %168 = vector.shape_cast %167 : vector<2x1x128xf32> to vector<2x128xf32>
    %cst_135 = arith.constant dense<0.000000e+00> : vector<2x128xf32>
    %169 = tpu.matmul %163, %130, %cst_135 {dimension_numbers = #tpu.dot_dimension_numbers<[1], [0], [0], [1], [0, 0, 1, 1], [], []>} : vector<2x32xf32>, vector<32x128xf32>, vector<2x128xf32> -> vector<2x128xf32>
    %170 = arith.addf %168, %169 : vector<2x128xf32>
    %171 = vector.extract_strided_slice %170 {offsets = [0, 0], sizes = [2, 32], strides = [1, 1]} : vector<2x128xf32> to vector<2x32xf32>
    %172 = arith.negf %171 : vector<2x32xf32>
    %173 = math.exp %172 : vector<2x32xf32>
    %cst_136 = arith.constant 1.000000e+00 : f32
    %174 = vector.broadcast %cst_136 : f32 to vector<2x32xf32>
    %175 = arith.addf %174, %173 : vector<2x32xf32>
    %176 = arith.divf %174, %175 : vector<2x32xf32>
    %177 = vector.extract_strided_slice %170 {offsets = [0, 32], sizes = [2, 32], strides = [1, 1]} : vector<2x128xf32> to vector<2x32xf32>
    %178 = arith.negf %177 : vector<2x32xf32>
    %179 = math.exp %178 : vector<2x32xf32>
    %cst_137 = arith.constant 1.000000e+00 : f32
    %180 = vector.broadcast %cst_137 : f32 to vector<2x32xf32>
    %181 = arith.addf %180, %179 : vector<2x32xf32>
    %182 = arith.divf %180, %181 : vector<2x32xf32>
    %183 = vector.extract_strided_slice %170 {offsets = [0, 64], sizes = [2, 32], strides = [1, 1]} : vector<2x128xf32> to vector<2x32xf32>
    %184 = math.tanh %183 : vector<2x32xf32>
    %185 = vector.extract_strided_slice %170 {offsets = [0, 96], sizes = [2, 32], strides = [1, 1]} : vector<2x128xf32> to vector<2x32xf32>
    %186 = arith.negf %185 : vector<2x32xf32>
    %187 = math.exp %186 : vector<2x32xf32>
    %cst_138 = arith.constant 1.000000e+00 : f32
    %188 = vector.broadcast %cst_138 : f32 to vector<2x32xf32>
    %189 = arith.addf %188, %187 : vector<2x32xf32>
    %190 = arith.divf %188, %189 : vector<2x32xf32>
    %191 = arith.mulf %182, %161 : vector<2x32xf32>
    %192 = arith.mulf %176, %184 : vector<2x32xf32>
    %193 = arith.addf %191, %192 : vector<2x32xf32>
    %194 = math.tanh %193 : vector<2x32xf32>
    %195 = arith.mulf %190, %194 : vector<2x32xf32>
    %c0_139 = arith.constant 0 : index
    %c1_140 = arith.constant 1 : index
    %c0_141 = arith.constant 0 : index
    %196 = vector.load %arg25[%c0_139, %c1_140, %c0_141] : memref<2x4x32xf32, #tpu.memory_space<vmem>>, vector<2x1x32xf32>
    %197 = vector.shape_cast %196 : vector<2x1x32xf32> to vector<2x32xf32>
    %198 = vector.shape_cast %195 : vector<2x32xf32> to vector<2x1x32xf32>
    tpu.vector_store %arg25[%c0_139, %c1_140, %c0_141], %198 {strides = array<i32>} : memref<2x4x32xf32, #tpu.memory_space<vmem>>, vector<2x1x32xf32>,
    %c0_142 = arith.constant 0 : index
    %c2_143 = arith.constant 2 : index
    %c0_144 = arith.constant 0 : index
    %199 = vector.load %arg24[%c0_142, %c2_143, %c0_144] : memref<2x4x128xf32, #tpu.memory_space<vmem>>, vector<2x1x128xf32>
    %200 = vector.shape_cast %199 : vector<2x1x128xf32> to vector<2x128xf32>
    %cst_145 = arith.constant dense<0.000000e+00> : vector<2x128xf32>
    %201 = tpu.matmul %195, %130, %cst_145 {dimension_numbers = #tpu.dot_dimension_numbers<[1], [0], [0], [1], [0, 0, 1, 1], [], []>} : vector<2x32xf32>, vector<32x128xf32>, vector<2x128xf32> -> vector<2x128xf32>
    %202 = arith.addf %200, %201 : vector<2x128xf32>
    %203 = vector.extract_strided_slice %202 {offsets = [0, 0], sizes = [2, 32], strides = [1, 1]} : vector<2x128xf32> to vector<2x32xf32>
    %204 = arith.negf %203 : vector<2x32xf32>
    %205 = math.exp %204 : vector<2x32xf32>
    %cst_146 = arith.constant 1.000000e+00 : f32
    %206 = vector.broadcast %cst_146 : f32 to vector<2x32xf32>
    %207 = arith.addf %206, %205 : vector<2x32xf32>
    %208 = arith.divf %206, %207 : vector<2x32xf32>
    %209 = vector.extract_strided_slice %202 {offsets = [0, 32], sizes = [2, 32], strides = [1, 1]} : vector<2x128xf32> to vector<2x32xf32>
    %210 = arith.negf %209 : vector<2x32xf32>
    %211 = math.exp %210 : vector<2x32xf32>
    %cst_147 = arith.constant 1.000000e+00 : f32
    %212 = vector.broadcast %cst_147 : f32 to vector<2x32xf32>
    %213 = arith.addf %212, %211 : vector<2x32xf32>
    %214 = arith.divf %212, %213 : vector<2x32xf32>
    %215 = vector.extract_strided_slice %202 {offsets = [0, 64], sizes = [2, 32], strides = [1, 1]} : vector<2x128xf32> to vector<2x32xf32>
    %216 = math.tanh %215 : vector<2x32xf32>
    %217 = vector.extract_strided_slice %202 {offsets = [0, 96], sizes = [2, 32], strides = [1, 1]} : vector<2x128xf32> to vector<2x32xf32>
    %218 = arith.negf %217 : vector<2x32xf32>
    %219 = math.exp %218 : vector<2x32xf32>
    %cst_148 = arith.constant 1.000000e+00 : f32
    %220 = vector.broadcast %cst_148 : f32 to vector<2x32xf32>
    %221 = arith.addf %220, %219 : vector<2x32xf32>
    %222 = arith.divf %220, %221 : vector<2x32xf32>
    %223 = arith.mulf %214, %193 : vector<2x32xf32>
    %224 = arith.mulf %208, %216 : vector<2x32xf32>
    %225 = arith.addf %223, %224 : vector<2x32xf32>
    %226 = math.tanh %225 : vector<2x32xf32>
    %227 = arith.mulf %222, %226 : vector<2x32xf32>
    %c0_149 = arith.constant 0 : index
    %c2_150 = arith.constant 2 : index
    %c0_151 = arith.constant 0 : index
    %228 = vector.load %arg25[%c0_149, %c2_150, %c0_151] : memref<2x4x32xf32, #tpu.memory_space<vmem>>, vector<2x1x32xf32>
    %229 = vector.shape_cast %228 : vector<2x1x32xf32> to vector<2x32xf32>
    %230 = vector.shape_cast %227 : vector<2x32xf32> to vector<2x1x32xf32>
    tpu.vector_store %arg25[%c0_149, %c2_150, %c0_151], %230 {strides = array<i32>} : memref<2x4x32xf32, #tpu.memory_space<vmem>>, vector<2x1x32xf32>,
    %c0_152 = arith.constant 0 : index
    %c3 = arith.constant 3 : index
    %c0_153 = arith.constant 0 : index
    %231 = vector.load %arg24[%c0_152, %c3, %c0_153] : memref<2x4x128xf32, #tpu.memory_space<vmem>>, vector<2x1x128xf32>
    %232 = vector.shape_cast %231 : vector<2x1x128xf32> to vector<2x128xf32>
    %cst_154 = arith.constant dense<0.000000e+00> : vector<2x128xf32>
    %233 = tpu.matmul %227, %130, %cst_154 {dimension_numbers = #tpu.dot_dimension_numbers<[1], [0], [0], [1], [0, 0, 1, 1], [], []>} : vector<2x32xf32>, vector<32x128xf32>, vector<2x128xf32> -> vector<2x128xf32>
    %234 = arith.addf %232, %233 : vector<2x128xf32>
    %235 = vector.extract_strided_slice %234 {offsets = [0, 0], sizes = [2, 32], strides = [1, 1]} : vector<2x128xf32> to vector<2x32xf32>
    %236 = arith.negf %235 : vector<2x32xf32>
    %237 = math.exp %236 : vector<2x32xf32>
    %cst_155 = arith.constant 1.000000e+00 : f32
    %238 = vector.broadcast %cst_155 : f32 to vector<2x32xf32>
    %239 = arith.addf %238, %237 : vector<2x32xf32>
    %240 = arith.divf %238, %239 : vector<2x32xf32>
    %241 = vector.extract_strided_slice %234 {offsets = [0, 32], sizes = [2, 32], strides = [1, 1]} : vector<2x128xf32> to vector<2x32xf32>
    %242 = arith.negf %241 : vector<2x32xf32>
    %243 = math.exp %242 : vector<2x32xf32>
    %cst_156 = arith.constant 1.000000e+00 : f32
    %244 = vector.broadcast %cst_156 : f32 to vector<2x32xf32>
    %245 = arith.addf %244, %243 : vector<2x32xf32>
    %246 = arith.divf %244, %245 : vector<2x32xf32>
    %247 = vector.extract_strided_slice %234 {offsets = [0, 64], sizes = [2, 32], strides = [1, 1]} : vector<2x128xf32> to vector<2x32xf32>
    %248 = math.tanh %247 : vector<2x32xf32>
    %249 = vector.extract_strided_slice %234 {offsets = [0, 96], sizes = [2, 32], strides = [1, 1]} : vector<2x128xf32> to vector<2x32xf32>
    %250 = arith.negf %249 : vector<2x32xf32>
    %251 = math.exp %250 : vector<2x32xf32>
    %cst_157 = arith.constant 1.000000e+00 : f32
    %252 = vector.broadcast %cst_157 : f32 to vector<2x32xf32>
    %253 = arith.addf %252, %251 : vector<2x32xf32>
    %254 = arith.divf %252, %253 : vector<2x32xf32>
    %255 = arith.mulf %246, %225 : vector<2x32xf32>
    %256 = arith.mulf %240, %248 : vector<2x32xf32>
    %257 = arith.addf %255, %256 : vector<2x32xf32>
    %258 = math.tanh %257 : vector<2x32xf32>
    %259 = arith.mulf %254, %258 : vector<2x32xf32>
    %c0_158 = arith.constant 0 : index
    %c3_159 = arith.constant 3 : index
    %c0_160 = arith.constant 0 : index
    %260 = vector.load %arg25[%c0_158, %c3_159, %c0_160] : memref<2x4x32xf32, #tpu.memory_space<vmem>>, vector<2x1x32xf32>
    %261 = vector.shape_cast %260 : vector<2x1x32xf32> to vector<2x32xf32>
    %262 = vector.shape_cast %259 : vector<2x32xf32> to vector<2x1x32xf32>
    tpu.vector_store %arg25[%c0_158, %c3_159, %c0_160], %262 {strides = array<i32>} : memref<2x4x32xf32, #tpu.memory_space<vmem>>, vector<2x1x32xf32>,
    %c0_161 = arith.constant 0 : index
    %c0_162 = arith.constant 0 : index
    %263 = vector.load %arg19[%c0_161, %c0_162] : memref<32x128xf32, #tpu.memory_space<vmem>>, vector<32x128xf32>
    %c0_163 = arith.constant 0 : index
    %c0_164 = arith.constant 0 : index
    %264 = vector.load %arg18[%c0_163, %c0_164] : memref<32x128xf32, #tpu.memory_space<vmem>>, vector<32x128xf32>
    %c0_165 = arith.constant 0 : index
    %c0_166 = arith.constant 0 : index
    %265 = vector.load %arg20[%c0_165, %c0_166] : memref<1x128xf32, #tpu.memory_space<vmem>>, vector<1x128xf32>
    %c0_167 = arith.constant 0 : index
    %c0_168 = arith.constant 0 : index
    %c0_169 = arith.constant 0 : index
    %266 = vector.load %arg25[%c0_167, %c0_168, %c0_169] : memref<2x4x32xf32, #tpu.memory_space<vmem>>, vector<1x4x32xf32>
    %267 = vector.shape_cast %266 : vector<1x4x32xf32> to vector<4x32xf32>
    %cst_170 = arith.constant dense<0.000000e+00> : vector<4x128xf32>
    %268 = tpu.matmul %267, %264, %cst_170 {dimension_numbers = #tpu.dot_dimension_numbers<[1], [0], [0], [1], [0, 0, 1, 1], [], []>} : vector<4x32xf32>, vector<32x128xf32>, vector<4x128xf32> -> vector<4x128xf32>
    %269 = vector.broadcast %265 : vector<1x128xf32> to vector<4x128xf32>
    %270 = arith.addf %268, %269 : vector<4x128xf32>
    %c0_171 = arith.constant 0 : index
    %c0_172 = arith.constant 0 : index
    %c0_173 = arith.constant 0 : index
    %271 = vector.load %arg24[%c0_171, %c0_172, %c0_173] : memref<2x4x128xf32, #tpu.memory_space<vmem>>, vector<1x4x128xf32>
    %272 = vector.shape_cast %271 : vector<1x4x128xf32> to vector<4x128xf32>
    %273 = vector.shape_cast %270 : vector<4x128xf32> to vector<1x4x128xf32>
    tpu.vector_store %arg24[%c0_171, %c0_172, %c0_173], %273 {strides = array<i32>} : memref<2x4x128xf32, #tpu.memory_space<vmem>>, vector<1x4x128xf32>,
    %c1_174 = arith.constant 1 : index
    %c0_175 = arith.constant 0 : index
    %c0_176 = arith.constant 0 : index
    %274 = vector.load %arg25[%c1_174, %c0_175, %c0_176] : memref<2x4x32xf32, #tpu.memory_space<vmem>>, vector<1x4x32xf32>
    %275 = vector.shape_cast %274 : vector<1x4x32xf32> to vector<4x32xf32>
    %cst_177 = arith.constant dense<0.000000e+00> : vector<4x128xf32>
    %276 = tpu.matmul %275, %264, %cst_177 {dimension_numbers = #tpu.dot_dimension_numbers<[1], [0], [0], [1], [0, 0, 1, 1], [], []>} : vector<4x32xf32>, vector<32x128xf32>, vector<4x128xf32> -> vector<4x128xf32>
    %277 = vector.broadcast %265 : vector<1x128xf32> to vector<4x128xf32>
    %278 = arith.addf %276, %277 : vector<4x128xf32>
    %c1_178 = arith.constant 1 : index
    %c0_179 = arith.constant 0 : index
    %c0_180 = arith.constant 0 : index
    %279 = vector.load %arg24[%c1_178, %c0_179, %c0_180] : memref<2x4x128xf32, #tpu.memory_space<vmem>>, vector<1x4x128xf32>
    %280 = vector.shape_cast %279 : vector<1x4x128xf32> to vector<4x128xf32>
    %281 = vector.shape_cast %278 : vector<4x128xf32> to vector<1x4x128xf32>
    tpu.vector_store %arg24[%c1_178, %c0_179, %c0_180], %281 {strides = array<i32>} : memref<2x4x128xf32, #tpu.memory_space<vmem>>, vector<1x4x128xf32>,
    %c1_181 = arith.constant 1 : index
    %c0_182 = arith.constant 0 : index
    %c0_183 = arith.constant 0 : index
    %282 = vector.load %arg7[%c1_181, %c0_182, %c0_183] : memref<2x2x32xf32, #tpu.memory_space<vmem>>, vector<1x2x32xf32>
    %283 = vector.shape_cast %282 : vector<1x2x32xf32> to vector<2x32xf32>
    %c1_184 = arith.constant 1 : index
    %c0_185 = arith.constant 0 : index
    %c0_186 = arith.constant 0 : index
    %284 = vector.load %arg8[%c1_184, %c0_185, %c0_186] : memref<2x2x32xf32, #tpu.memory_space<vmem>>, vector<1x2x32xf32>
    %285 = vector.shape_cast %284 : vector<1x2x32xf32> to vector<2x32xf32>
    %c0_187 = arith.constant 0 : index
    %c0_188 = arith.constant 0 : index
    %c0_189 = arith.constant 0 : index
    %286 = vector.load %arg24[%c0_187, %c0_188, %c0_189] : memref<2x4x128xf32, #tpu.memory_space<vmem>>, vector<2x1x128xf32>
    %287 = vector.shape_cast %286 : vector<2x1x128xf32> to vector<2x128xf32>
    %cst_190 = arith.constant dense<0.000000e+00> : vector<2x128xf32>
    %288 = tpu.matmul %283, %263, %cst_190 {dimension_numbers = #tpu.dot_dimension_numbers<[1], [0], [0], [1], [0, 0, 1, 1], [], []>} : vector<2x32xf32>, vector<32x128xf32>, vector<2x128xf32> -> vector<2x128xf32>
    %289 = arith.addf %287, %288 : vector<2x128xf32>
    %290 = vector.extract_strided_slice %289 {offsets = [0, 0], sizes = [2, 32], strides = [1, 1]} : vector<2x128xf32> to vector<2x32xf32>
    %291 = arith.negf %290 : vector<2x32xf32>
    %292 = math.exp %291 : vector<2x32xf32>
    %cst_191 = arith.constant 1.000000e+00 : f32
    %293 = vector.broadcast %cst_191 : f32 to vector<2x32xf32>
    %294 = arith.addf %293, %292 : vector<2x32xf32>
    %295 = arith.divf %293, %294 : vector<2x32xf32>
    %296 = vector.extract_strided_slice %289 {offsets = [0, 32], sizes = [2, 32], strides = [1, 1]} : vector<2x128xf32> to vector<2x32xf32>
    %297 = arith.negf %296 : vector<2x32xf32>
    %298 = math.exp %297 : vector<2x32xf32>
    %cst_192 = arith.constant 1.000000e+00 : f32
    %299 = vector.broadcast %cst_192 : f32 to vector<2x32xf32>
    %300 = arith.addf %299, %298 : vector<2x32xf32>
    %301 = arith.divf %299, %300 : vector<2x32xf32>
    %302 = vector.extract_strided_slice %289 {offsets = [0, 64], sizes = [2, 32], strides = [1, 1]} : vector<2x128xf32> to vector<2x32xf32>
    %303 = math.tanh %302 : vector<2x32xf32>
    %304 = vector.extract_strided_slice %289 {offsets = [0, 96], sizes = [2, 32], strides = [1, 1]} : vector<2x128xf32> to vector<2x32xf32>
    %305 = arith.negf %304 : vector<2x32xf32>
    %306 = math.exp %305 : vector<2x32xf32>
    %cst_193 = arith.constant 1.000000e+00 : f32
    %307 = vector.broadcast %cst_193 : f32 to vector<2x32xf32>
    %308 = arith.addf %307, %306 : vector<2x32xf32>
    %309 = arith.divf %307, %308 : vector<2x32xf32>
    %310 = arith.mulf %301, %285 : vector<2x32xf32>
    %311 = arith.mulf %295, %303 : vector<2x32xf32>
    %312 = arith.addf %310, %311 : vector<2x32xf32>
    %313 = math.tanh %312 : vector<2x32xf32>
    %314 = arith.mulf %309, %313 : vector<2x32xf32>
    %c0_194 = arith.constant 0 : index
    %c1_195 = arith.constant 1 : index
    %c0_196 = arith.constant 0 : index
    %315 = vector.load %arg24[%c0_194, %c1_195, %c0_196] : memref<2x4x128xf32, #tpu.memory_space<vmem>>, vector<2x1x128xf32>
    %316 = vector.shape_cast %315 : vector<2x1x128xf32> to vector<2x128xf32>
    %cst_197 = arith.constant dense<0.000000e+00> : vector<2x128xf32>
    %317 = tpu.matmul %314, %263, %cst_197 {dimension_numbers = #tpu.dot_dimension_numbers<[1], [0], [0], [1], [0, 0, 1, 1], [], []>} : vector<2x32xf32>, vector<32x128xf32>, vector<2x128xf32> -> vector<2x128xf32>
    %318 = arith.addf %316, %317 : vector<2x128xf32>
    %319 = vector.extract_strided_slice %318 {offsets = [0, 0], sizes = [2, 32], strides = [1, 1]} : vector<2x128xf32> to vector<2x32xf32>
    %320 = arith.negf %319 : vector<2x32xf32>
    %321 = math.exp %320 : vector<2x32xf32>
    %cst_198 = arith.constant 1.000000e+00 : f32
    %322 = vector.broadcast %cst_198 : f32 to vector<2x32xf32>
    %323 = arith.addf %322, %321 : vector<2x32xf32>
    %324 = arith.divf %322, %323 : vector<2x32xf32>
    %325 = vector.extract_strided_slice %318 {offsets = [0, 32], sizes = [2, 32], strides = [1, 1]} : vector<2x128xf32> to vector<2x32xf32>
    %326 = arith.negf %325 : vector<2x32xf32>
    %327 = math.exp %326 : vector<2x32xf32>
    %cst_199 = arith.constant 1.000000e+00 : f32
    %328 = vector.broadcast %cst_199 : f32 to vector<2x32xf32>
    %329 = arith.addf %328, %327 : vector<2x32xf32>
    %330 = arith.divf %328, %329 : vector<2x32xf32>
    %331 = vector.extract_strided_slice %318 {offsets = [0, 64], sizes = [2, 32], strides = [1, 1]} : vector<2x128xf32> to vector<2x32xf32>
    %332 = math.tanh %331 : vector<2x32xf32>
    %333 = vector.extract_strided_slice %318 {offsets = [0, 96], sizes = [2, 32], strides = [1, 1]} : vector<2x128xf32> to vector<2x32xf32>
    %334 = arith.negf %333 : vector<2x32xf32>
    %335 = math.exp %334 : vector<2x32xf32>
    %cst_200 = arith.constant 1.000000e+00 : f32
    %336 = vector.broadcast %cst_200 : f32 to vector<2x32xf32>
    %337 = arith.addf %336, %335 : vector<2x32xf32>
    %338 = arith.divf %336, %337 : vector<2x32xf32>
    %339 = arith.mulf %330, %312 : vector<2x32xf32>
    %340 = arith.mulf %324, %332 : vector<2x32xf32>
    %341 = arith.addf %339, %340 : vector<2x32xf32>
    %342 = math.tanh %341 : vector<2x32xf32>
    %343 = arith.mulf %338, %342 : vector<2x32xf32>
    %c0_201 = arith.constant 0 : index
    %c2_202 = arith.constant 2 : index
    %c0_203 = arith.constant 0 : index
    %344 = vector.load %arg24[%c0_201, %c2_202, %c0_203] : memref<2x4x128xf32, #tpu.memory_space<vmem>>, vector<2x1x128xf32>
    %345 = vector.shape_cast %344 : vector<2x1x128xf32> to vector<2x128xf32>
    %cst_204 = arith.constant dense<0.000000e+00> : vector<2x128xf32>
    %346 = tpu.matmul %343, %263, %cst_204 {dimension_numbers = #tpu.dot_dimension_numbers<[1], [0], [0], [1], [0, 0, 1, 1], [], []>} : vector<2x32xf32>, vector<32x128xf32>, vector<2x128xf32> -> vector<2x128xf32>
    %347 = arith.addf %345, %346 : vector<2x128xf32>
    %348 = vector.extract_strided_slice %347 {offsets = [0, 0], sizes = [2, 32], strides = [1, 1]} : vector<2x128xf32> to vector<2x32xf32>
    %349 = arith.negf %348 : vector<2x32xf32>
    %350 = math.exp %349 : vector<2x32xf32>
    %cst_205 = arith.constant 1.000000e+00 : f32
    %351 = vector.broadcast %cst_205 : f32 to vector<2x32xf32>
    %352 = arith.addf %351, %350 : vector<2x32xf32>
    %353 = arith.divf %351, %352 : vector<2x32xf32>
    %354 = vector.extract_strided_slice %347 {offsets = [0, 32], sizes = [2, 32], strides = [1, 1]} : vector<2x128xf32> to vector<2x32xf32>
    %355 = arith.negf %354 : vector<2x32xf32>
    %356 = math.exp %355 : vector<2x32xf32>
    %cst_206 = arith.constant 1.000000e+00 : f32
    %357 = vector.broadcast %cst_206 : f32 to vector<2x32xf32>
    %358 = arith.addf %357, %356 : vector<2x32xf32>
    %359 = arith.divf %357, %358 : vector<2x32xf32>
    %360 = vector.extract_strided_slice %347 {offsets = [0, 64], sizes = [2, 32], strides = [1, 1]} : vector<2x128xf32> to vector<2x32xf32>
    %361 = math.tanh %360 : vector<2x32xf32>
    %362 = vector.extract_strided_slice %347 {offsets = [0, 96], sizes = [2, 32], strides = [1, 1]} : vector<2x128xf32> to vector<2x32xf32>
    %363 = arith.negf %362 : vector<2x32xf32>
    %364 = math.exp %363 : vector<2x32xf32>
    %cst_207 = arith.constant 1.000000e+00 : f32
    %365 = vector.broadcast %cst_207 : f32 to vector<2x32xf32>
    %366 = arith.addf %365, %364 : vector<2x32xf32>
    %367 = arith.divf %365, %366 : vector<2x32xf32>
    %368 = arith.mulf %359, %341 : vector<2x32xf32>
    %369 = arith.mulf %353, %361 : vector<2x32xf32>
    %370 = arith.addf %368, %369 : vector<2x32xf32>
    %371 = math.tanh %370 : vector<2x32xf32>
    %372 = arith.mulf %367, %371 : vector<2x32xf32>
    %c0_208 = arith.constant 0 : index
    %c3_209 = arith.constant 3 : index
    %c0_210 = arith.constant 0 : index
    %373 = vector.load %arg24[%c0_208, %c3_209, %c0_210] : memref<2x4x128xf32, #tpu.memory_space<vmem>>, vector<2x1x128xf32>
    %374 = vector.shape_cast %373 : vector<2x1x128xf32> to vector<2x128xf32>
    %cst_211 = arith.constant dense<0.000000e+00> : vector<2x128xf32>
    %375 = tpu.matmul %372, %263, %cst_211 {dimension_numbers = #tpu.dot_dimension_numbers<[1], [0], [0], [1], [0, 0, 1, 1], [], []>} : vector<2x32xf32>, vector<32x128xf32>, vector<2x128xf32> -> vector<2x128xf32>
    %376 = arith.addf %374, %375 : vector<2x128xf32>
    %377 = vector.extract_strided_slice %376 {offsets = [0, 0], sizes = [2, 32], strides = [1, 1]} : vector<2x128xf32> to vector<2x32xf32>
    %378 = arith.negf %377 : vector<2x32xf32>
    %379 = math.exp %378 : vector<2x32xf32>
    %cst_212 = arith.constant 1.000000e+00 : f32
    %380 = vector.broadcast %cst_212 : f32 to vector<2x32xf32>
    %381 = arith.addf %380, %379 : vector<2x32xf32>
    %382 = arith.divf %380, %381 : vector<2x32xf32>
    %383 = vector.extract_strided_slice %376 {offsets = [0, 32], sizes = [2, 32], strides = [1, 1]} : vector<2x128xf32> to vector<2x32xf32>
    %384 = arith.negf %383 : vector<2x32xf32>
    %385 = math.exp %384 : vector<2x32xf32>
    %cst_213 = arith.constant 1.000000e+00 : f32
    %386 = vector.broadcast %cst_213 : f32 to vector<2x32xf32>
    %387 = arith.addf %386, %385 : vector<2x32xf32>
    %388 = arith.divf %386, %387 : vector<2x32xf32>
    %389 = vector.extract_strided_slice %376 {offsets = [0, 64], sizes = [2, 32], strides = [1, 1]} : vector<2x128xf32> to vector<2x32xf32>
    %390 = math.tanh %389 : vector<2x32xf32>
    %391 = vector.extract_strided_slice %376 {offsets = [0, 96], sizes = [2, 32], strides = [1, 1]} : vector<2x128xf32> to vector<2x32xf32>
    %392 = arith.negf %391 : vector<2x32xf32>
    %393 = math.exp %392 : vector<2x32xf32>
    %cst_214 = arith.constant 1.000000e+00 : f32
    %394 = vector.broadcast %cst_214 : f32 to vector<2x32xf32>
    %395 = arith.addf %394, %393 : vector<2x32xf32>
    %396 = arith.divf %394, %395 : vector<2x32xf32>
    %397 = arith.mulf %388, %370 : vector<2x32xf32>
    %398 = arith.mulf %382, %390 : vector<2x32xf32>
    %399 = arith.addf %397, %398 : vector<2x32xf32>
    %400 = math.tanh %399 : vector<2x32xf32>
    %401 = arith.mulf %396, %400 : vector<2x32xf32>
    %c0_215 = arith.constant 0 : index
    %c0_216 = arith.constant 0 : index
    %402 = vector.load %arg9[%c0_215, %c0_216] : memref<32x16xf32, #tpu.memory_space<vmem>>, vector<32x16xf32>
    %cst_217 = arith.constant dense<0.000000e+00> : vector<2x16xf32>
    %403 = tpu.matmul %401, %402, %cst_217 {dimension_numbers = #tpu.dot_dimension_numbers<[1], [0], [0], [1], [0, 0, 1, 1], [], []>} : vector<2x32xf32>, vector<32x16xf32>, vector<2x16xf32> -> vector<2x16xf32>
    %c0_218 = arith.constant 0 : index
    %c0_219 = arith.constant 0 : index
    %404 = vector.load %arg10[%c0_218, %c0_219] : memref<1x16xf32, #tpu.memory_space<vmem>>, vector<1x16xf32>
    %405 = vector.broadcast %404 : vector<1x16xf32> to vector<2x16xf32>
    %406 = arith.addf %403, %405 : vector<2x16xf32>
    %cst_220 = arith.constant 0.000000e+00 : f32
    %407 = vector.broadcast %cst_220 : f32 to vector<2x16xf32>
    %408 = arith.maximumf %406, %407 : vector<2x16xf32>
    %c0_221 = arith.constant 0 : index
    %c0_222 = arith.constant 0 : index
    %409 = vector.load %arg11[%c0_221, %c0_222] : memref<16x8xf32, #tpu.memory_space<vmem>>, vector<16x8xf32>
    %cst_223 = arith.constant dense<0.000000e+00> : vector<2x8xf32>
    %410 = tpu.matmul %408, %409, %cst_223 {dimension_numbers = #tpu.dot_dimension_numbers<[1], [0], [0], [1], [0, 0, 1, 1], [], []>} : vector<2x16xf32>, vector<16x8xf32>, vector<2x8xf32> -> vector<2x8xf32>
    %c0_224 = arith.constant 0 : index
    %c0_225 = arith.constant 0 : index
    %411 = vector.load %arg12[%c0_224, %c0_225] : memref<1x8xf32, #tpu.memory_space<vmem>>, vector<1x8xf32>
    %412 = vector.broadcast %411 : vector<1x8xf32> to vector<2x8xf32>
    %413 = arith.addf %410, %412 : vector<2x8xf32>
    %cst_226 = arith.constant 0.000000e+00 : f32
    %414 = vector.broadcast %cst_226 : f32 to vector<2x8xf32>
    %415 = arith.maximumf %413, %414 : vector<2x8xf32>
    %c0_227 = arith.constant 0 : index
    %c0_228 = arith.constant 0 : index
    %416 = vector.load %arg13[%c0_227, %c0_228] : memref<8x3xf32, #tpu.memory_space<vmem>>, vector<8x3xf32>
    %cst_229 = arith.constant dense<0.000000e+00> : vector<2x3xf32>
    %417 = tpu.matmul %415, %416, %cst_229 {dimension_numbers = #tpu.dot_dimension_numbers<[1], [0], [0], [1], [0, 0, 1, 1], [], []>} : vector<2x8xf32>, vector<8x3xf32>, vector<2x3xf32> -> vector<2x3xf32>
    %c0_230 = arith.constant 0 : index
    %c0_231 = arith.constant 0 : index
    %418 = vector.load %arg14[%c0_230, %c0_231] : memref<1x3xf32, #tpu.memory_space<vmem>>, vector<1x3xf32>
    %419 = vector.broadcast %418 : vector<1x3xf32> to vector<2x3xf32>
    %420 = arith.addf %417, %419 : vector<2x3xf32>
    %c0_232 = arith.constant 0 : index
    %c0_233 = arith.constant 0 : index
    %421 = vector.load %arg21[%c0_232, %c0_233] : memref<2x3xf32, #tpu.memory_space<vmem>>, vector<2x3xf32>
    tpu.vector_store %arg21[%c0_232, %c0_233], %420 {strides = array<i32>} : memref<2x3xf32, #tpu.memory_space<vmem>>, vector<2x3xf32>,
    return
  }
}

</mosaic_0001>

<bundles_post_ra>
// kernel: tpu_custom_call.1
= control target key start
LH: loop header
LB: loop body
LE: loop exit
PB: predicated region body
PF: predicated region fallthrough
CT: control target
= control target key end

     0   :  { %s4812_s0 = inlined_call_operand.vmem [shape: f32[2,50,4], index: 0, kind: input, shape index: {}]   ;;  %s4813_s1 = inlined_call_operand.vmem [shape: f32[3,4,16], index: 1, kind: input, shape index: {}]   ;;  %s4814_s2 = inlined_call_operand.vmem [shape: f32[1,16], index: 2, kind: input, shape index: {}]   ;;  %s4815_s3 = inlined_call_operand.vmem [shape: f32[1,16], index: 3, kind: input, shape index: {}]   ;;  %s4816_s4 = inlined_call_operand.vmem [shape: f32[3,16,32], index: 4, kind: input, shape index: {}]   ;;  %s4817_s5 = inlined_call_operand.hbm [shape: f32[1,32], index: 5, kind: input, shape index: {}]   ;;  %s4818_s6 = inlined_call_operand.hbm [shape: f32[1,32], index: 6, kind: input, shape index: {}]   ;;  %s4819_s7 = inlined_call_operand.vmem [shape: f32[2,2,32], index: 7, kind: input, shape index: {}]   ;;  %s4820_s8 = inlined_call_operand.vmem [shape: f32[2,2,32], index: 8, kind: input, shape index: {}]   ;;  %s4821_s9 = inlined_call_operand.vmem [shape: f32[32,16], index: 9, kind: input, shape index: {}]   ;;  %s4822_s10 = inlined_call_operand.vmem [shape: f32[1,16], index: 10, kind: input, shape index: {}]   ;;  %s4823_s11 = inlined_call_operand.vmem [shape: f32[16,8], index: 11, kind: input, shape index: {}]   ;;  %s4824_s12 = inlined_call_operand.vmem [shape: f32[1,8], index: 12, kind: input, shape index: {}]   ;;  %s4825_s13 = inlined_call_operand.vmem [shape: f32[8,3], index: 13, kind: input, shape index: {}]   ;;  %s4826_s14 = inlined_call_operand.vmem [shape: f32[1,3], index: 14, kind: input, shape index: {}]   ;;  %s4827_s15 = inlined_call_operand.vmem [shape: f32[32,128], index: 15, kind: input, shape index: {}]   ;;  %s4828_s16 = inlined_call_operand.vmem [shape: f32[32,128], index: 16, kind: input, shape index: {}]   ;;  %s4829_s17 = inlined_call_operand.vmem [shape: f32[1,128], index: 17, kind: input, shape index: {}]   ;;  %s4830_s18 = inlined_call_operand.vmem [shape: f32[32,128], index: 18, kind: input, shape index: {}]   ;;  %s4831_s19 = inlined_call_operand.vmem [shape: f32[32,128], index: 19, kind: input, shape index: {}]   ;;  %s4832_s20 = inlined_call_operand.vmem [shape: f32[1,128], index: 20, kind: input, shape index: {}]   ;;  %s4833_s21 = inlined_call_operand.hbm [shape: f32[2,3], index: 21, kind: output, shape index: {}]  }
   0x1   :  { %4838 = sst [smem:[#allocation15_spill]] %s4812_s0 }
   0x2   :  { %4839 = sst [smem:[#allocation16_spill]] %s4813_s1 }
   0x3   :  { %4840 = sst [smem:[#allocation17_spill]] %s4814_s2 }
   0x4   :  { %4841 = sst [smem:[#allocation18_spill]] %s4815_s3 }
   0x5   :  { %4842 = sst [smem:[#allocation19_spill]] %s4816_s4 }
   0x6   :  { %4843 = sst [smem:[#allocation20_spill]] %s4817_s5 }
   0x7   :  { %26 = vsyncpa [#allocation7], 0 }
   0x8   :  { %27 = vsyncpa [#allocation10], 0 }
   0x9   :  { %28 = vsyncpa [#allocation8], 0  ;;  %s4112_s2 = smov [#allocation6]   ;;  %s4113_s26 = smov [#allocation9]  }
   0xa   :  { %s45_s25 = sshll.u32 %s4112_s2, 4  ;;  %s55_s27 = sshll.u32 %s4113_s26, 4  ;;  %s46_s25 = int_to_ptr.vmem [resolvable:$true] %s45_s25  ;;  %s56_s27 = int_to_ptr.vmem [resolvable:$true] %s55_s27 }
   0xb   :  { %s4844_s29 = sld [smem:[#allocation20_spill]] }
  0x11   :  { %s4040_s0 = scalar_lea.hbm %s4844_s29, 16 }
  0x12   :  { %p4041_p0 = scmp.ne.s32.totalorder %s4844_s29, %s4040_s0  ;;  %p4044_p1 = scmp.lt.u32.totalorder %s4040_s0, %s4844_s29 }
  0x14   :  { %p4046_p2 = pnand %p4044_p1, %p4041_p0 }
  0x16   :  { %4049 = shalt.err (!%p4046_p2)
}
  0x17   :  { %s4050_s23 = scalar_lea.vmem %s46_s25, 16  ;;  %s4054_s1 = scalar_lea.vmem %s46_s25, 32 }
  0x18   :  { %p4051_p3 = scmp.ne.s32.totalorder %s46_s25, %s4050_s23  ;;  %p4055_p4 = scmp.lt.s32.totalorder %s46_s25, %s46_s25 }
  0x19   :  { %p4056_p5 = scmp.lt.s32.totalorder %s4054_s1, %s4050_s23 }
  0x1b   :  { %p4057_p6 = por %p4056_p5, %p4055_p4 }
  0x1d   :  { %p4058_p7 = pnand %p4057_p6, %p4051_p3 }
  0x1f   :  { %4061 = shalt.err (!%p4058_p7)
}
  0x20   :  { %48 = dma.hbm_to_vmem [thread:$0]  %s4844_s29, 16, %s46_s25, [#allocation7]  }
  0x21   :  { %s4062_s28 = scalar_lea.hbm %s4818_s6, 16 }
  0x22   :  { %p4063_p8 = scmp.ne.s32.totalorder %s4818_s6, %s4062_s28  ;;  %p4066_p9 = scmp.lt.u32.totalorder %s4062_s28, %s4818_s6 }
  0x24   :  { %p4068_p10 = pnand %p4066_p9, %p4063_p8 }
  0x26   :  { %4071 = shalt.err (!%p4068_p10)
}
  0x27   :  { %s4072_s22 = scalar_lea.vmem %s56_s27, 16  ;;  %s4076_s23 = scalar_lea.vmem %s56_s27, 32 }
  0x28   :  { %p4073_p11 = scmp.ne.s32.totalorder %s56_s27, %s4072_s22  ;;  %p4077_p12 = scmp.lt.s32.totalorder %s56_s27, %s56_s27 }
  0x29   :  { %p4078_p13 = scmp.lt.s32.totalorder %s4076_s23, %s4072_s22 }
  0x2b   :  { %p4079_p0 = por %p4078_p13, %p4077_p12 }
  0x2d   :  { %p4080_p1 = pnand %p4079_p0, %p4073_p11 }
  0x2f   :  { %4083 = shalt.err (!%p4080_p1)
}
  0x30   :  { %58 = dma.hbm_to_vmem [thread:$0]  %s4818_s6, 16, %s56_s27, [#allocation10]  }
  0x31   :  { %4106 = dma.done.wait [#allocation7], 16  }
  0x32   :  { %4107 = vsyncadd [#allocation7], 4294967280 }
  0x33   :  { %4108 = dma.done.wait [#allocation10], 16  }
  0x34   :  { %4109 = vsyncadd [#allocation10], 4294967280  ;;  %vm142_vm0 = vcmask 1043456   ;;  %s4845_s2 = sld [smem:[#allocation16_spill]]  ;;  %s4846_s28 = sld [smem:[#allocation15_spill]]  ;;  %vm115_vm1 = vcmask 1046528  }
  0x35   :  { %vm129_vm2 = vcmask 31744   ;;  %vm353_vm3 = vcmask 1045504   ;;  %s4847_s30 = sld [smem:[#allocation19_spill]]  ;;  %s4848_s3 = sld [smem:[#allocation17_spill]]  ;;  %vm515_vm4 = vcmask 130048   ;;  %vm4115_vm5 = vmmov 0  }
  0x36   :  { %s4849_s6 = sld [smem:[#allocation18_spill]]  ;;  %s4117_s5 = smov 32   ;;  %vm814_vm6 = vcmask 259072   ;;  %vm812_vm7 = vcmask 261120   ;;  %vm1843_vm8 = vcmask 1041409   ;;  %vm1837_vm9 = vcmask 253952  }
  0x37   :  { %vm3157_vm10 = vcmask 64512   ;;  %s4119_s0 = smov [#allocation11]   ;;  %vm3231_vm11 = vcmask 17408  }
  0x3a   :  { %v3249_v0 = vld [vmem:[%s4845_s2 + $0x4] sm:$0xf]  ;;  %v99_v2 = vld [vmem:[%s4846_s28 + $0x8] sm:$0xff]  ;;  %v105_v5 = vld [vmem:[%s4845_s2] sm:$0xf] }
  0x3b   :  { %v98_v1 = vld [vmem:[%s4846_s28] sm:$0xff]  ;;  %3504 = vmatprep.subr.msk.mxu0 %vm142_vm0, %v3249_v0  ;;  %v117_v4 = vrot.slane %v99_v2, 1  ;;  %v100_v6 = vld [vmem:[%s4846_s28 + $0x10] sm:$0xff]  ;;  %v101_v7 = vld [vmem:[%s4846_s28 + $0x18] sm:$0xff]  ;;  %v355_v24 = vrot.slane %v99_v2, 2 }
  0x3c   :  { %v116_v3 = vrot.slane %v98_v1, 1  ;;  %3505 = vmatpush3.msk.msra.mxu0 %vm142_vm0, %v3249_v0  ;;  %v119_v8 = vrot.slane %v100_v6, 1  ;;  %v121_v9 = vrot.slane %v101_v7, 1  ;;  %v102_v10 = vld [vmem:[%s4846_s28 + $0x20] sm:$0xff]  ;;  %v103_v11 = vld [vmem:[%s4846_s28 + $0x28] sm:$0xff]  ;;  %v354_v23 = vrot.slane %v98_v1, 2 }
  0x3d   :  { %3515 = vmatprep.subr.msk.mxu0 %vm142_vm0, %v105_v5  ;;  %v123_v13 = vrot.slane %v102_v10, 1  ;;  %v125_v14 = vrot.slane %v103_v11, 1  ;;  %v104_v15 = vld [vmem:[%s4846_s28 + $0x30] sm:$0x3]  ;;  %v3264_v18 = vld [vmem:[%s4845_s2 + $0x8] sm:$0xf] }
  0x3e   :  { %v118_v12 = vsel %vm115_vm1, %v116_v3, %v117_v4  ;;  %v120_v16 = vsel %vm115_vm1, %v117_v4, %v119_v8  ;;  %v122_v17 = vsel %vm115_vm1, %v119_v8, %v121_v9  ;;  %v127_v20 = vrot.slane %v104_v15, 1  ;;  %v3274_v36 = vld [vmem:[%s4847_s30 + $0x10] sm:$0xff]  ;;  %v3275_v37 = vld [vmem:[%s4847_s30 + $0x18] sm:$0xff]  ;;  %v537_v39 = vld [vmem:[%s4847_s30] sm:$0xff] }
  0x3f   :  { %3506 = vmatprep.mubr.msk.f32.mxu0 %vm129_vm2, %v118_v12  ;;  %v124_v19 = vsel %vm115_vm1, %v121_v9, %v123_v13  ;;  %v126_v21 = vsel %vm115_vm1, %v123_v13, %v125_v14  ;;  %v357_v25 = vrot.slane %v100_v6, 2  ;;  %v356_v26 = vsel %vm353_vm3, %v354_v23, %v355_v24  ;;  %v538_v40 = vld [vmem:[%s4847_s30 + $0x8] sm:$0xff]  ;;  %v4339_v42 = vld [vmem:[%s4848_s3] ss:$0 sm:$0xff] }
  0x40   :  { %3507 = vmatmul.mubr.msk.f32.vlgmr.msra.gmra.mrb[0].mxu0 %vm129_vm2, %v120_v16  ;;  %v128_v22 = vsel %vm115_vm1, %v125_v14, %v127_v20  ;;  %v359_v27 = vrot.slane %v101_v7, 2  ;;  %v361_v29 = vrot.slane %v102_v10, 2  ;;  %v363_v31 = vrot.slane %v103_v11, 2  ;;  %v4344_v44 = vld [vmem:[%s4849_s6] ss:$0 sm:$0xff] }
  0x41   :  { %3516 = vmatpush3.msk.msra.mxu0 %vm142_vm0, %v105_v5  ;;  %3509 = vmatprep.mubr.msk.f32.mxu0 %vm129_vm2, %v122_v17  ;;  %v358_v28 = vsel %vm353_vm3, %v355_v24, %v357_v25  ;;  %v365_v33 = vrot.slane %v104_v15, 2  ;;  %v3767_v38 = vpack.c.bf16 %v3275_v37, %v3274_v36  ;;  %v4332_v41 = vpack.c.bf16 %v538_v40, %v537_v39  ;;  %v3280_v14 = vld [vmem:[%s4847_s30 + $0x20] sm:$0xff]  ;;  %v3281_v15 = vld [vmem:[%s4847_s30 + $0x28] sm:$0xff]  ;;  %v4416_v36 = vld [vmem:[#allocation9] ss:$0 sm:$0xff] }
  0x42   :  { %3526 = vmatprep.subr.msk.mxu0 %vm142_vm0, %v3264_v18  ;;  %v360_v30 = vsel %vm353_vm3, %v357_v25, %v359_v27  ;;  %v362_v32 = vsel %vm353_vm3, %v359_v27, %v361_v29  ;;  %v364_v34 = vsel %vm353_vm3, %v361_v29, %v363_v31  ;;  %v93_v23 = vld [vmem:[%s4827_s15] sm:$0xff]  ;;  %v94_v24 = vld [vmem:[%s4827_s15 + $0x8] sm:$0xff]  ;;  %v95_v25 = vld [vmem:[%s4827_s15 + $0x10] sm:$0xff]  ;;  %v4116_v29 = vmov 0.0  }
  0x43   :  { %v366_v35 = vsel %vm353_vm3, %v363_v31, %v365_v33  ;;  %3768 = vmatprep.subr.bf16.mxu1 %v3767_v38  ;;  %v4393_v27 = vpack.c.bf16 %v94_v24, %v93_v23  ;;  %v3295_v31 = vld [vmem:[%s4845_s2 + $0x4] sm:$0xf]  ;;  %v1688_v23 = vld [vmem:[%s4828_s16 + $0x10] sm:$0xff]  ;;  %v1689_v24 = vld [vmem:[%s4828_s16 + $0x18] sm:$0xff] }
  0x44   :  { %3510 = vmatmul.mubr.msk.f32.gmra.mrb[2].mxu0 %vm129_vm2, %v124_v19  ;;  %3770 = vmatpush3.bf16.msra.mxu1 %v3767_v38  ;;  %v4371_v19 = vpack.c.bf16 %v3281_v15, %v3280_v14  ;;  %v1686_v15 = vld [vmem:[%s4828_s16] sm:$0xff] }
  0x45   :  { %3512 = vmatprep.mubr.msk.f32.mxu0 %vm129_vm2, %v126_v21  ;;  %3772 = vmatprep.subr.bf16.mxu1 %v4332_v41 }
  0x48   :  { %3513 = vmatmul.mubr.msk.f32.gmra.mrb[4].mxu0 %vm129_vm2, %v128_v22 }
  0x49   :  { %3517 = vmatprep.mubr.msk.f32.mxu0 %vm129_vm2, %v98_v1 }
  0x4c   :  { %3518 = vmatmul.mubr.msk.f32.vlgmr.msra.gmra.mrb[0].mxu0 %vm129_vm2, %v99_v2 }
  0x4d   :  { %3527 = vmatpush3.msk.msra.mxu0 %vm142_vm0, %v3264_v18  ;;  %3520 = vmatprep.mubr.msk.f32.mxu0 %vm129_vm2, %v100_v6 }
  0x4e   :  { %3786 = vmatprep.subr.bf16.mxu0 %v3767_v38 }
  0x50   :  { %3521 = vmatmul.mubr.msk.f32.gmra.mrb[2].mxu0 %vm129_vm2, %v101_v7 }
  0x51   :  { %3523 = vmatprep.mubr.msk.f32.mxu0 %vm129_vm2, %v102_v10 }
  0x54   :  { %3524 = vmatmul.mubr.msk.f32.gmra.mrb[4].mxu0 %vm129_vm2, %v103_v11 }
  0x55   :  { %3528 = vmatprep.mubr.msk.f32.mxu0 %vm129_vm2, %v356_v26  ;;  %v4114_v26 = vmov 0.0|0.0  }
  0x58   :  { %3529 = vmatmul.mubr.msk.f32.vlgmr.msra.gmra.mrb[0].mxu0 %vm129_vm2, %v358_v28  ;;  %v96_v28 = vld [vmem:[%s4827_s15 + $0x18] sm:$0xff] }
  0x59   :  { %3531 = vmatprep.mubr.msk.f32.mxu0 %vm129_vm2, %v360_v30  ;;  %3788 = vmatpush3.bf16.msra.mxu0 %v3767_v38  ;;  %v4401_v30 = vpack.c.bf16 %v96_v28, %v95_v25 }
  0x5a   :  { %3790 = vmatprep.subr.bf16.mxu0 %v4332_v41 }
  0x5c   :  { %3532 = vmatmul.mubr.msk.f32.gmra.mrb[2].mxu0 %vm129_vm2, %v362_v32  ;;  %v1691_v32 = vld [vmem:[%s4820_s8] sm:$0x3] }
  0x5d   :  { %3534 = vmatprep.mubr.msk.f32.mxu0 %vm129_vm2, %v364_v34  ;;  %v1788_v33 = vrot.slane %v1691_v32, 1  ;;  %v4414_v34 = vld [vmem:[#allocation6] ss:$0 sm:$0xff] }
  0x5f   :  { %1791 = vrot.lane.b32.xlu1 %v1788_v33, %s4117_s5 }
  0x60   :  { %3535 = vmatmul.mubr.msk.f32.gmra.mrb[4].mxu0 %vm129_vm2, %v366_v35 }
  0x63   :  { %1789 = vrot.lane.b32.xlu1 %v1691_v32, %s4117_s5 }
 0x12b   :  { %v3530_v43 = vpop.f32.mrb[0].mxu0 }
 0x12c   :  { %v491_v45 = vmul.f32 %v3530_v43, %v4339_v42  ;;  %v448_v46 = vpop.f32.mrb[1].mxu0 }
 0x12d   :  { %v490_v47 = vmul.f32 %v4339_v42, %v448_v46 }
 0x12e   :  { %v504_v48 = vadd.f32 %v4344_v44, %v491_v45 }
 0x12f   :  { %v503_v49 = vadd.f32 %v4344_v44, %v490_v47  ;;  %v3533_v50 = vpop.f32.mrb[2].mxu0  ;;  %v3288_v47 = vld [vmem:[%s4846_s28 + $0x38] sm:$0xff] }
 0x130   :  { %v510_v51 = vmax.f32 %v504_v48, 0.0  ;;  %v493_v52 = vmul.f32 %v3533_v50, %v4339_v42  ;;  %v458_v53 = vpop.f32.mrb[3].mxu0  ;;  %v3289_v48 = vld [vmem:[%s4846_s28 + $0x40] sm:$0xff] }
 0x131   :  { %v509_v54 = vmax.f32 %v503_v49, 0.0  ;;  %v492_v55 = vmul.f32 %v4339_v42, %v458_v53  ;;  %v920_v49 = vrot.slane %v3288_v47, 1  ;;  %v921_v50 = vrot.slane %v3289_v48, 1 }
 0x132   :  { %517 = vst.msk [vmem:[#allocation2 + $0x8] sm:$0xff] %vm515_vm4, %v510_v51  ;;  %v506_v56 = vadd.f32 %v4344_v44, %v493_v52  ;;  %v3290_v51 = vld [vmem:[%s4846_s28 + $0x48] sm:$0xff]  ;;  %v3291_v52 = vld [vmem:[%s4846_s28 + $0x50] sm:$0xff] }
 0x133   :  { %516 = vst.msk [vmem:[#allocation2] sm:$0xff] %vm515_vm4, %v509_v54  ;;  %v505_v57 = vadd.f32 %v4344_v44, %v492_v55  ;;  %v3536_v58 = vpop.f32.mrb[4].mxu0  ;;  %v1159_v14 = vrot.slane %v3291_v52, 2 }
 0x134   :  { %v512_v59 = vmax.f32 %v506_v56, 0.0  ;;  %v495_v60 = vmul.f32 %v3536_v58, %v4339_v42  ;;  %v468_v61 = vpop.f32.mrb[5].mxu0 }
 0x135   :  { %v511_v62 = vmax.f32 %v505_v57, 0.0  ;;  %v494_v63 = vmul.f32 %v4339_v42, %v468_v61  ;;  %v923_v57 = vrot.slane %v3290_v51, 1  ;;  %v3292_v61 = vld [vmem:[%s4846_s28 + $0x58] sm:$0xff] }
 0x136   :  { %519 = vst.msk [vmem:[#allocation2 + $0x18] sm:$0xff] %vm515_vm4, %v512_v59  ;;  %v508_v0 = vadd.f32 %v4344_v44, %v495_v60  ;;  %v922_v59 = vsel %vm115_vm1, %v920_v49, %v921_v50  ;;  %v925_v60 = vrot.slane %v3291_v52, 1 }
 0x137   :  { %518 = vst.msk [vmem:[#allocation2 + $0x10] sm:$0xff] %vm515_vm4, %v511_v62  ;;  %v507_v1 = vadd.f32 %v4344_v44, %v494_v63  ;;  %v911_v62 = vld [vmem:[%s4845_s2] sm:$0xf] }
 0x138   :  { %v514_v2 = vmax.f32 %v508_v0, 0.0  ;;  %v3293_v63 = vld [vmem:[%s4846_s28 + $0x60] sm:$0xff]  ;;  %v924_v0 = vsel %vm115_vm1, %v921_v50, %v923_v57 }
 0x139   :  { %v513_v3 = vmax.f32 %v507_v1, 0.0  ;;  %v927_v1 = vrot.slane %v3292_v61, 1 }
 0x13a   :  { %521 = vst.msk [vmem:[#allocation2 + $0x28] sm:$0xff] %vm515_vm4, %v514_v2  ;;  %v926_v2 = vsel %vm115_vm1, %v923_v57, %v925_v60 }
 0x13b   :  { %520 = vst.msk [vmem:[#allocation2 + $0x20] sm:$0xff] %vm515_vm4, %v513_v3  ;;  %v929_v3 = vrot.slane %v3293_v63, 1 }
 0x13e   :  { %v522_v4 = vld [vmem:[#allocation2] ss:$3 sm:$0xff]  ;;  %v526_v5 = vld [vmem:[#allocation2 + $0x1] ss:$3 sm:$0xff]  ;;  %v532_v9 = vld [vmem:[#allocation2 + $0x2] ss:$3 sm:$0xff] }
 0x13f   :  { %v529_v6 = vmax.f32 %v522_v4, %v526_v5  ;;  %v3294_v4 = vld [vmem:[%s4846_s28 + $0x68] sm:$0x3] }
 0x140   :  { %v3310_v5 = vld [vmem:[%s4845_s2 + $0x8] sm:$0xf]  ;;  %v1165_v28 = vrot.slane %v3294_v4, 2 }
 0x141   :  { %v535_v11 = vmax.f32 %v529_v6, %v532_v9  ;;  %v928_v6 = vsel %vm115_vm1, %v925_v60, %v927_v1 }
 0x142   :  { %v524_v7 = vld [vmem:[#allocation2 + $0x18] ss:$3 sm:$0xff]  ;;  %v528_v8 = vld [vmem:[#allocation2 + $0x19] ss:$3 sm:$0xff]  ;;  %v534_v12 = vld [vmem:[#allocation2 + $0x1a] ss:$3 sm:$0xff] }
 0x143   :  { %v530_v10 = vmax.f32 %v524_v7, %v528_v8  ;;  %v544_v16 = vrot.slane %v535_v11, 1  ;;  %v708_v21 = vrot.slane %v535_v11, 2  ;;  %v931_v7 = vrot.slane %v3294_v4, 1 }
 0x144   :  { %v930_v8 = vsel %vm115_vm1, %v927_v1, %v929_v3 }
 0x145   :  { %v536_v13 = vmax.f32 %v530_v10, %v534_v12  ;;  %v932_v9 = vsel %vm115_vm1, %v929_v3, %v931_v7  ;;  %v1154_v10 = vrot.slane %v3288_v47, 2  ;;  %v1157_v12 = vrot.slane %v3290_v51, 2 }
 0x147   :  { %v545_v17 = vrot.slane %v536_v13, 1  ;;  %v709_v20 = vrot.slane %v536_v13, 2 }
 0x149   :  { %v546_v18 = vsel %vm115_vm1, %v544_v16, %v545_v17  ;;  %v710_v22 = vsel %vm353_vm3, %v708_v21, %v709_v20  ;;  %v1687_v16 = vld [vmem:[%s4828_s16 + $0x8] sm:$0xff]  ;;  %v1160_v21 = vsel %vm353_vm3, %v1157_v12, %v1159_v14 }
 0x14a   :  { %3541 = vmatprep.mubr.msk.f32.mxu1 %vm515_vm4, %v546_v18  ;;  %v1161_v18 = vrot.slane %v3292_v61, 2 }
 0x14b   :  { %3542 = vmatmul.mubr.msk.f32.vlgmr.msra.gmra.mrb[0].mxu1 %vm515_vm4, %v545_v17 }
 0x14c   :  { %3774 = vmatpush3.bf16.msra.mxu1 %v4332_v41  ;;  %3548 = vmatprep.mubr.msk.f32.mxu1 %vm515_vm4, %v535_v11  ;;  %v1155_v11 = vrot.slane %v3289_v48, 2  ;;  %v1162_v25 = vsel %vm353_vm3, %v1159_v14, %v1161_v18 }
 0x14d   :  { %3776 = vmatprep.subr.bf16.mxu1 %v4371_v19 }
 0x14e   :  { %v1158_v17 = vsel %vm353_vm3, %v1155_v11, %v1157_v12 }
 0x153   :  { %3549 = vmatmul.mubr.msk.f32.vlgmr.msra.gmra.mrb[0].mxu1 %vm515_vm4, %v536_v13  ;;  %v1156_v13 = vsel %vm353_vm3, %v1154_v10, %v1155_v11 }
 0x154   :  { %3778 = vmatpush3.bf16.msra.mxu1 %v4371_v19  ;;  %3555 = vmatprep.mubr.msk.f32.mxu1 %vm515_vm4, %v710_v22  ;;  %v1163_v22 = vrot.slane %v3293_v63, 2 }
 0x155   :  { %3779 = vmatprep.subr.bf16.mxu1 %v4114_v26 }
 0x156   :  { %v1164_v32 = vsel %vm353_vm3, %v1161_v18, %v1163_v22  ;;  %v1166_v33 = vsel %vm353_vm3, %v1163_v22, %v1165_v28 }
 0x15b   :  { %3556 = vmatmul.mubr.msk.f32.vlgmr.msra.gmra.mrb[0].mxu1 %vm515_vm4, %v709_v20  ;;  %v4485_v20 = vpack.c.bf16 %v1687_v16, %v1686_v15 }
 0x15c   :  { %3566 = vmatprep.mubr.msk.f32.mxu1 %vm4115_vm5, %v4116_v29  ;;  %3781 = vmatpush3.bf16.msra.mxu1 %v4393_v27 }
 0x15d   :  { %3782 = vmatprep.subr.bf16.mxu1 %v4114_v26 }
 0x160   :  { %3784 = vmatpush3.bf16.msra.mxu1 %v4401_v30 }
 0x161   :  { %3569 = vmatprep.subr.msk.mxu1 %vm142_vm0, %v3295_v31 }
 0x22e   :  { %v3557_v35 = vpop.f32.mrb[0].mxu1 }
 0x22f   :  { %v800_v37 = vmul.f32 %v3557_v35, %v4414_v34  ;;  %v781_v38 = vpop.f32.mrb[1].mxu1  ;;  %v1690_v35 = vld [vmem:[%s4819_s7] sm:$0x3] }
 0x230   :  { %v799_v39 = vmul.f32 %v4414_v34, %v781_v38 }
 0x231   :  { %v809_v40 = vadd.f32 %v4416_v36, %v800_v37  ;;  %v4523_v37 = vld [vmem:[%s4829_s17] ss:$0 sm:$0xff]  ;;  %s4118_s17 = smov 64  }
 0x232   :  { %v808_v43 = vadd.f32 %v4416_v36, %v799_v39 }
 0x233   :  { %v811_v45 = vmax.f32 %v809_v40, 0.0 }
 0x234   :  { %v810_v46 = vmax.f32 %v808_v43, 0.0 }
 0x235   :  { %815 = vst.msk [vmem:[#allocation3 + $0x8] sm:$0x3f] %vm814_vm6, %v811_v45 }
 0x236   :  { %813 = vst.msk [vmem:[#allocation3] sm:$0xff] %vm812_vm7, %v810_v46 }
 0x23d   :  { %v816_v53 = vld [vmem:[#allocation3] ss:$3 sm:$0xf]  ;;  %v818_v54 = vld [vmem:[#allocation3 + $0x1] ss:$3 sm:$0xf] }
 0x23e   :  { %v819_v55 = vmax.f32 %v816_v53, %v818_v54  ;;  %v821_v56 = vld [vmem:[#allocation3 + $0x2] ss:$3 sm:$0xf] }
 0x240   :  { %v822_v58 = vmax.f32 %v819_v55, %v821_v56 }
 0x242   :  { %3567 = vmatmul.mubr.msk.f32.vlgmr.msra.gmra.mrb[2].mxu1 %vm812_vm7, %v822_v58 }
 0x243   :  { %3570 = vmatpush3.msk.msra.mxu1 %vm142_vm0, %v3295_v31  ;;  %3571 = vmatprep.mubr.msk.f32.mxu1 %vm129_vm2, %v922_v59  ;;  %v4498_v31 = vpack.c.bf16 %v1689_v24, %v1688_v23 }
 0x244   :  { %3580 = vmatprep.subr.msk.mxu1 %vm142_vm0, %v911_v62 }
 0x246   :  { %3572 = vmatmul.mubr.msk.f32.vlgmr.msra.gmra.mrb[4].mxu1 %vm129_vm2, %v924_v0 }
 0x247   :  { %3581 = vmatpush3.msk.msra.mxu1 %vm142_vm0, %v911_v62  ;;  %3574 = vmatprep.mubr.msk.f32.mxu1 %vm129_vm2, %v926_v2 }
 0x248   :  { %3591 = vmatprep.subr.msk.mxu1 %vm142_vm0, %v3310_v5 }
 0x24a   :  { %3575 = vmatmul.mubr.msk.f32.gmra.mrb[6].mxu1 %vm129_vm2, %v928_v6 }
 0x24b   :  { %3577 = vmatprep.mubr.msk.f32.mxu1 %vm129_vm2, %v930_v8 }
 0x24e   :  { %3578 = vmatmul.mubr.msk.f32.gmra.mrb[8].mxu1 %vm129_vm2, %v932_v9 }
 0x24f   :  { %3582 = vmatprep.mubr.msk.f32.mxu1 %vm129_vm2, %v3288_v47 }
 0x252   :  { %3583 = vmatmul.mubr.msk.f32.vlgmr.msra.gmra.mrb[4].mxu1 %vm129_vm2, %v3289_v48 }
 0x253   :  { %3592 = vmatpush3.msk.msra.mxu1 %vm142_vm0, %v3310_v5  ;;  %3585 = vmatprep.mubr.msk.f32.mxu1 %vm129_vm2, %v3290_v51 }
 0x254   :  { %3803 = vmatprep.subr.bf16.mxu1 %v4114_v26 }
 0x256   :  { %3586 = vmatmul.mubr.msk.f32.gmra.mrb[6].mxu1 %vm129_vm2, %v3291_v52 }
 0x257   :  { %3588 = vmatprep.mubr.msk.f32.mxu1 %vm129_vm2, %v3292_v61 }
 0x25a   :  { %3589 = vmatmul.mubr.msk.f32.gmra.mrb[8].mxu1 %vm129_vm2, %v3293_v63 }
 0x25b   :  { %3593 = vmatprep.mubr.msk.f32.mxu1 %vm129_vm2, %v1156_v13 }
 0x25e   :  { %3594 = vmatmul.mubr.msk.f32.vlgmr.msra.gmra.mrb[4].mxu1 %vm129_vm2, %v1158_v17 }
 0x25f   :  { %3596 = vmatprep.mubr.msk.f32.mxu1 %vm129_vm2, %v1160_v21  ;;  %3805 = vmatpush3.bf16.msra.mxu1 %v4485_v20 }
 0x260   :  { %3806 = vmatprep.subr.bf16.mxu1 %v4114_v26 }
 0x262   :  { %3597 = vmatmul.mubr.msk.f32.gmra.mrb[6].mxu1 %vm129_vm2, %v1162_v25 }
 0x263   :  { %3599 = vmatprep.mubr.msk.f32.mxu1 %vm129_vm2, %v1164_v32  ;;  %3808 = vmatpush3.bf16.msra.mxu1 %v4498_v31 }
 0x264   :  { %3815 = vmatprep.subr.bf16.mxu1 %v4114_v26 }
 0x266   :  { %3600 = vmatmul.mubr.msk.f32.gmra.mrb[8].mxu1 %vm129_vm2, %v1166_v33 }
 0x267   :  { %3642 = vmatprep.mubr.msk.f32.mxu1 %vm4115_vm5, %v4116_v29 }
 0x26a   :  { %3643 = vmatmul.mubr.msk.f32.vlgmr.msra.gmra.mrb[10].mxu1 %vm812_vm7, %v1690_v35 }
 0x26b   :  { %3817 = vmatpush3.bf16.msra.mxu1 %v4485_v20  ;;  %3664 = vmatprep.mubr.msk.f32.mxu1 %vm4115_vm5, %v4116_v29 }
 0x26c   :  { %3818 = vmatprep.subr.bf16.mxu1 %v4114_v26 }
 0x26f   :  { %3820 = vmatpush3.bf16.msra.mxu1 %v4498_v31 }
 0x270   :  { %3827 = vmatprep.subr.bf16.mxu1 %v4114_v26 }
 0x315   :  { %v898_v38 = vpop.f32.mrb[2].mxu1 }
 0x316   :  { %v899_v39 = vadd.f32 %v4523_v37, %v898_v38  ;;  %v3568_v40 = vpop.f32.mrb[3].mxu1 }
 0x318   :  { %902 = vst [vmem:[#allocation4] sm:$0xf] %v899_v39 }
 0x331   :  { %v3595_v43 = vpop.f32.mrb[4].mxu1 }
 0x332   :  { %v1291_v45 = vmul.f32 %v3595_v43, %v4339_v42  ;;  %v1248_v46 = vpop.f32.mrb[5].mxu1 }
 0x333   :  { %v1290_v47 = vmul.f32 %v4339_v42, %v1248_v46  ;;  %v1692_v46 = vld [vmem:[#allocation4] sm:$0x1] }
 0x334   :  { %v1304_v48 = vadd.f32 %v4344_v44, %v1291_v45 }
 0x335   :  { %v1303_v49 = vadd.f32 %v4344_v44, %v1290_v47  ;;  %v3598_v50 = vpop.f32.mrb[6].mxu1 }
 0x336   :  { %v1310_v51 = vmax.f32 %v1304_v48, 0.0  ;;  %v1293_v52 = vmul.f32 %v3598_v50, %v4339_v42  ;;  %v1258_v53 = vpop.f32.mrb[7].mxu1 }
 0x337   :  { %v1309_v54 = vmax.f32 %v1303_v49, 0.0  ;;  %v1292_v55 = vmul.f32 %v4339_v42, %v1258_v53 }
 0x338   :  { %1316 = vst.msk [vmem:[#allocation2 + $0x8] sm:$0xff] %vm515_vm4, %v1310_v51  ;;  %v1306_v56 = vadd.f32 %v4344_v44, %v1293_v52 }
 0x339   :  { %1315 = vst.msk [vmem:[#allocation2] sm:$0xff] %vm515_vm4, %v1309_v54  ;;  %v1305_v57 = vadd.f32 %v4344_v44, %v1292_v55  ;;  %v3601_v58 = vpop.f32.mrb[8].mxu1 }
 0x33a   :  { %v1312_v59 = vmax.f32 %v1306_v56, 0.0  ;;  %v1295_v60 = vmul.f32 %v3601_v58, %v4339_v42  ;;  %v1268_v61 = vpop.f32.mrb[9].mxu1 }
 0x33b   :  { %v1311_v62 = vmax.f32 %v1305_v57, 0.0  ;;  %v1294_v63 = vmul.f32 %v4339_v42, %v1268_v61  ;;  %v1792_v61 = vpop.permute.xlu1 %1791 }
 0x33c   :  { %1318 = vst.msk [vmem:[#allocation2 + $0x18] sm:$0xff] %vm515_vm4, %v1312_v59  ;;  %v1308_v0 = vadd.f32 %v4344_v44, %v1295_v60 }
 0x33d   :  { %1317 = vst.msk [vmem:[#allocation2 + $0x10] sm:$0xff] %vm515_vm4, %v1311_v62  ;;  %v1307_v1 = vadd.f32 %v4344_v44, %v1294_v63  ;;  %v4542_v2 = vpop.f32.mrb[10].mxu1 }
 0x33e   :  { %v1314_v3 = vmax.f32 %v1308_v0, 0.0  ;;  %v3644_v4 = vpop.f32.mrb[11].mxu1  ;;  %v1768_v40 = vrot.slane %v4542_v2, 1  ;;  %v1771_v47 = vadd.f32 %v4542_v2, %v1692_v46 }
 0x33f   :  { %v1313_v5 = vmax.f32 %v1307_v1, 0.0  ;;  %v1790_v63 = vpop.permute.xlu1 %1789 }
 0x340   :  { %1320 = vst.msk [vmem:[#allocation2 + $0x28] sm:$0xff] %vm515_vm4, %v1314_v3 }
 0x341   :  { %1319 = vst.msk [vmem:[#allocation2 + $0x20] sm:$0xff] %vm515_vm4, %v1313_v5 }
 0x344   :  { %v1321_v6 = vld [vmem:[#allocation2] ss:$3 sm:$0xff]  ;;  %v1323_v7 = vld [vmem:[#allocation2 + $0x1] ss:$3 sm:$0xff]  ;;  %v1327_v10 = vld [vmem:[#allocation2 + $0x2] ss:$3 sm:$0xff] }
 0x345   :  { %v1325_v42 = vmax.f32 %v1321_v6, %v1323_v7 }
 0x347   :  { %v1329_v12 = vmax.f32 %v1325_v42, %v1327_v10 }
 0x348   :  { %v1322_v8 = vld [vmem:[#allocation2 + $0x18] ss:$3 sm:$0xff]  ;;  %v1324_v9 = vld [vmem:[#allocation2 + $0x19] ss:$3 sm:$0xff]  ;;  %v1328_v13 = vld [vmem:[#allocation2 + $0x1a] ss:$3 sm:$0xff] }
 0x349   :  { %v1326_v11 = vmax.f32 %v1322_v8, %v1324_v9  ;;  %v1337_v44 = vrot.slane %v1329_v12, 1  ;;  %v1500_v18 = vrot.slane %v1329_v12, 2 }
 0x34b   :  { %v1330_v14 = vmax.f32 %v1326_v11, %v1328_v13  ;;  %v1840_v13 = vld [vmem:[#allocation4 + $0x1] sm:$0x1] }
 0x34d   :  { %v1338_v15 = vrot.slane %v1330_v14, 1  ;;  %v1501_v17 = vrot.slane %v1330_v14, 2 }
 0x34f   :  { %v1339_v16 = vsel %vm115_vm1, %v1337_v44, %v1338_v15  ;;  %v1502_v21 = vsel %vm353_vm3, %v1500_v18, %v1501_v17 }
 0x350   :  { %3606 = vmatprep.mubr.msk.f32.mxu0 %vm515_vm4, %v1339_v16 }
 0x351   :  { %3607 = vmatmul.mubr.msk.f32.vlgmr.msra.gmra.mrb[6].mxu0 %vm515_vm4, %v1338_v15 }
 0x352   :  { %3792 = vmatpush3.bf16.msra.mxu0 %v4332_v41  ;;  %3613 = vmatprep.mubr.msk.f32.mxu0 %vm515_vm4, %v1329_v12 }
 0x353   :  { %3794 = vmatprep.subr.bf16.mxu0 %v4371_v19 }
 0x359   :  { %3614 = vmatmul.mubr.msk.f32.vlgmr.msra.gmra.mrb[6].mxu0 %vm515_vm4, %v1330_v14 }
 0x35a   :  { %3796 = vmatpush3.bf16.msra.mxu0 %v4371_v19  ;;  %3620 = vmatprep.mubr.msk.f32.mxu0 %vm515_vm4, %v1502_v21 }
 0x35b   :  { %3797 = vmatprep.subr.bf16.mxu0 %v4114_v26 }
 0x361   :  { %3621 = vmatmul.mubr.msk.f32.vlgmr.msra.gmra.mrb[6].mxu0 %vm515_vm4, %v1501_v17 }
 0x362   :  { %3799 = vmatpush3.bf16.msra.mxu0 %v4393_v27  ;;  %3631 = vmatprep.mubr.msk.f32.mxu0 %vm4115_vm5, %v4116_v29 }
 0x363   :  { %3800 = vmatprep.subr.bf16.mxu0 %v4114_v26 }
 0x366   :  { %3802 = vmatpush3.bf16.msra.mxu0 %v4401_v30 }
 0x367   :  { %3809 = vmatprep.subr.bf16.mxu0 %v4114_v26 }
 0x434   :  { %v3622_v41 = vpop.f32.mrb[6].mxu0 }
 0x435   :  { %v1592_v19 = vmul.f32 %v3622_v41, %v4414_v34  ;;  %v1573_v22 = vpop.f32.mrb[7].mxu0 }
 0x436   :  { %v1591_v23 = vmul.f32 %v4414_v34, %v1573_v22 }
 0x437   :  { %v1601_v24 = vadd.f32 %v4416_v36, %v1592_v19 }
 0x438   :  { %v1600_v25 = vadd.f32 %v4416_v36, %v1591_v23 }
 0x439   :  { %v1603_v27 = vmax.f32 %v1601_v24, 0.0 }
 0x43a   :  { %v1602_v28 = vmax.f32 %v1600_v25, 0.0 }
 0x43b   :  { %1605 = vst.msk [vmem:[#allocation3 + $0x8] sm:$0x3f] %vm814_vm6, %v1603_v27 }
 0x43c   :  { %1604 = vst.msk [vmem:[#allocation3] sm:$0xff] %vm812_vm7, %v1602_v28 }
 0x443   :  { %v1606_v32 = vld [vmem:[#allocation3] ss:$3 sm:$0xf]  ;;  %v1607_v30 = vld [vmem:[#allocation3 + $0x1] ss:$3 sm:$0xf] }
 0x444   :  { %v1608_v33 = vmax.f32 %v1606_v32, %v1607_v30  ;;  %v1609_v35 = vld [vmem:[#allocation3 + $0x2] ss:$3 sm:$0xf] }
 0x446   :  { %v1610_v38 = vmax.f32 %v1608_v33, %v1609_v35 }
 0x448   :  { %3632 = vmatmul.mubr.msk.f32.vlgmr.msra.gmra.mrb[8].mxu0 %vm812_vm7, %v1610_v38 }
 0x449   :  { %3811 = vmatpush3.bf16.msra.mxu0 %v4485_v20  ;;  %3653 = vmatprep.mubr.msk.f32.mxu0 %vm4115_vm5, %v4116_v29 }
 0x44a   :  { %3812 = vmatprep.subr.bf16.mxu0 %v4114_v26 }
 0x44d   :  { %3814 = vmatpush3.bf16.msra.mxu0 %v4498_v31 }
 0x44e   :  { %3821 = vmatprep.subr.bf16.mxu0 %v4114_v26 }
 0x51b   :  { %v1680_v34 = vpop.f32.mrb[8].mxu0 }
 0x51c   :  { %v1681_v36 = vadd.f32 %v4523_v37, %v1680_v34  ;;  %v3633_v39 = vpop.f32.mrb[9].mxu0  ;;  %v3334_v37 = vmul.f32 -1.442695, %v1771_v47 }
 0x51e   :  { %1685 = vst [vmem:[#allocation4 + $0x4] sm:$0xf] %v1681_v36 }
 0x525   :  { %v1693_v43 = vld [vmem:[#allocation4 + $0x4] sm:$0x1]  ;;  %v1841_v17 = vld [vmem:[#allocation4 + $0x5] sm:$0x1] }
 0x526   :  { %v1772_v45 = vadd.f32 %v1768_v40, %v1693_v43 }
 0x528   :  { %3912 = vtanh.f32 %v1772_v45  ;;  %v3335_v50 = vmul.f32 -1.442695, %v1772_v45 }
 0x529   :  { %3914 = vtanh.f32 %v1771_v47 }
 0x52a   :  { %3916 = vpow2.f32 %v3335_v50 }
 0x52b   :  { %3918 = vpow2.f32 %v3334_v37 }
 0x532   :  { %v3913_v48 = vpop.eup %3912 }
 0x533   :  { %1801 = vrot.lane.b32.xlu0 %v3913_v48, %s4118_s17  ;;  %v3915_v49 = vpop.eup %3914 }
 0x534   :  { %v3917_v51 = vpop.eup %3916 }
 0x535   :  { %v1780_v52 = vadd.f32 1.0, %v3917_v51  ;;  %v3919_v53 = vpop.eup %3918 }
 0x536   :  { %v1779_v54 = vadd.f32 1.0, %v3919_v53 }
 0x537   :  { %1799 = vrot.lane.b32.xlu0 %v3915_v49, %s4118_s17  ;;  %3920 = vrcp.f32 %v1780_v52  ;;  %v1983_v52 = vld [vmem:[#allocation4 + $0x2] sm:$0x1] }
 0x538   :  { %3922 = vrcp.f32 %v1779_v54 }
 0x541   :  { %v3921_v55 = vpop.eup %3920 }
 0x542   :  { %v3923_v58 = vpop.eup %3922  ;;  %v1796_v62 = vmul.f32 %v3921_v55, %v1792_v61 }
 0x543   :  { %v1795_v2 = vmul.f32 %v3923_v58, %v1790_v63 }
 0x5a5   :  { %v1802_v56 = vpop.permute.xlu0 %1801 }
 0x5a6   :  { %v1806_v57 = vmul.f32 %v3921_v55, %v1802_v56 }
 0x5a8   :  { %1811 = vrot.lane.b32.xlu0 %v1806_v57, %s4117_s5  ;;  %v1984_v57 = vld [vmem:[#allocation4 + $0x6] sm:$0x1] }
 0x5a9   :  { %v1800_v59 = vpop.permute.xlu0 %1799 }
 0x5aa   :  { %v1805_v60 = vmul.f32 %v3923_v58, %v1800_v59 }
 0x5ac   :  { %1809 = vrot.lane.b32.xlu1 %v1805_v60, %s4117_s5 }
 0x61a   :  { %v1812_v0 = vpop.permute.xlu0 %1811 }
 0x61b   :  { %v1816_v1 = vadd.f32 %v1812_v0, %v1796_v62 }
 0x61d   :  { %3924 = vtanh.f32 %v1816_v1 }
 0x61e   :  { %v1810_v3 = vpop.permute.xlu1 %1809 }
 0x61f   :  { %v1815_v4 = vadd.f32 %v1810_v3, %v1795_v2 }
 0x621   :  { %3926 = vtanh.f32 %v1815_v4 }
 0x627   :  { %v3925_v5 = vpop.eup %3924 }
 0x628   :  { %1823 = vrot.lane.b32.xlu0 %v3925_v5, %s4118_s17 }
 0x62b   :  { %v3927_v6 = vpop.eup %3926 }
 0x62c   :  { %1821 = vrot.lane.b32.xlu1 %v3927_v6, %s4118_s17 }
 0x69a   :  { %v1824_v7 = vpop.permute.xlu0 %1823 }
 0x69b   :  { %v4586_v42 = vmul.f32 %v3921_v55, %v1824_v7 }
 0x69d   :  { %v1842_v9 = vrot.slane %v4586_v42, 7 }
 0x69e   :  { %v1822_v8 = vpop.permute.xlu1 %1821 }
 0x69f   :  { %v4589_v10 = vmul.f32 %v3923_v58, %v1822_v8 }
 0x6a1   :  { %v1844_v11 = vsel %vm1843_vm8, %v1842_v9, %v4589_v10 }
 0x6a2   :  { %1845 = vrot.lane.b32.xlu0 %v1844_v11, %s4117_s5 }
 0x714   :  { %v1846_v12 = vpop.permute.xlu0 %1845 }
 0x715   :  { %3654 = vmatmul.mubr.msk.f32.vlgmr.msra.gmra.mrb[10].mxu0 %vm812_vm7, %v1846_v12 }
 0x716   :  { %3823 = vmatpush3.bf16.msra.mxu0 %v4485_v20  ;;  %3675 = vmatprep.mubr.msk.f32.mxu0 %vm4115_vm5, %v4116_v29 }
 0x717   :  { %3824 = vmatprep.subr.bf16.mxu0 %v4114_v26 }
 0x71a   :  { %3826 = vmatpush3.bf16.msra.mxu0 %v4498_v31 }
 0x71b   :  { %3833 = vmatprep.subr.bf16.mxu0 %v4114_v26 }
 0x7e8   :  { %v1915_v14 = vpop.f32.mrb[10].mxu0 }
 0x7e9   :  { %v1920_v44 = vrot.slane %v1915_v14, 1  ;;  %v1923_v15 = vadd.f32 %v1915_v14, %v1840_v13  ;;  %v3655_v16 = vpop.f32.mrb[11].mxu0 }
 0x7eb   :  { %v1924_v18 = vadd.f32 %v1920_v44, %v1841_v17  ;;  %3928 = vtanh.f32 %v1923_v15  ;;  %v3337_v41 = vmul.f32 -1.442695, %v1923_v15 }
 0x7ed   :  { %3930 = vtanh.f32 %v1924_v18  ;;  %v3338_v19 = vmul.f32 -1.442695, %v1924_v18 }
 0x7ee   :  { %3932 = vpow2.f32 %v3337_v41 }
 0x7ef   :  { %3934 = vpow2.f32 %v3338_v19 }
 0x7f5   :  { %v3929_v21 = vpop.eup %3928 }
 0x7f6   :  { %1943 = vrot.lane.b32.xlu0 %v3929_v21, %s4118_s17 }
 0x7f7   :  { %v3931_v20 = vpop.eup %3930 }
 0x7f8   :  { %1945 = vrot.lane.b32.xlu1 %v3931_v20, %s4118_s17  ;;  %v3933_v31 = vpop.eup %3932 }
 0x7f9   :  { %v3935_v22 = vpop.eup %3934  ;;  %v1931_v23 = vadd.f32 1.0, %v3933_v31 }
 0x7fa   :  { %v1932_v24 = vadd.f32 1.0, %v3935_v22  ;;  %v2125_v22 = vld [vmem:[#allocation4 + $0x3] sm:$0x1] }
 0x7fb   :  { %3936 = vrcp.f32 %v1931_v23 }
 0x7fc   :  { %3938 = vrcp.f32 %v1932_v24 }
 0x805   :  { %v3937_v25 = vpop.eup %3936 }
 0x806   :  { %v3939_v32 = vpop.eup %3938  ;;  %v1939_v35 = vmul.f32 %v3937_v25, %v1815_v4 }
 0x807   :  { %v1940_v36 = vmul.f32 %v3939_v32, %v1816_v1 }
 0x868   :  { %v1944_v27 = vpop.permute.xlu0 %1943 }
 0x869   :  { %v1949_v28 = vmul.f32 %v3937_v25, %v1944_v27 }
 0x86a   :  { %v1946_v30 = vpop.permute.xlu1 %1945 }
 0x86b   :  { %1953 = vrot.lane.b32.xlu0 %v1949_v28, %s4117_s5  ;;  %v1950_v33 = vmul.f32 %v3939_v32, %v1946_v30  ;;  %v2126_v28 = vld [vmem:[#allocation4 + $0x7] sm:$0x1] }
 0x86d   :  { %1955 = vrot.lane.b32.xlu1 %v1950_v33, %s4117_s5 }
 0x8dd   :  { %v1954_v38 = vpop.permute.xlu0 %1953 }
 0x8de   :  { %v1959_v34 = vadd.f32 %v1954_v38, %v1939_v35 }
 0x8df   :  { %v1956_v39 = vpop.permute.xlu1 %1955 }
 0x8e0   :  { %3940 = vtanh.f32 %v1959_v34  ;;  %v1960_v40 = vadd.f32 %v1956_v39, %v1940_v36 }
 0x8e2   :  { %3942 = vtanh.f32 %v1960_v40 }
 0x8ea   :  { %v3941_v43 = vpop.eup %3940 }
 0x8eb   :  { %1965 = vrot.lane.b32.xlu0 %v3941_v43, %s4118_s17 }
 0x8ec   :  { %v3943_v45 = vpop.eup %3942 }
 0x8ed   :  { %1967 = vrot.lane.b32.xlu1 %v3943_v45, %s4118_s17 }
 0x95d   :  { %v1966_v46 = vpop.permute.xlu0 %1965 }
 0x95e   :  { %v4609_v49 = vmul.f32 %v3937_v25, %v1966_v46 }
 0x95f   :  { %v1968_v47 = vpop.permute.xlu1 %1967 }
 0x960   :  { %v4607_v48 = vmul.f32 %v3939_v32, %v1968_v47 }
 0x962   :  { %v1985_v50 = vrot.slane %v4607_v48, 7 }
 0x964   :  { %v1986_v37 = vsel %vm1843_vm8, %v1985_v50, %v4609_v49 }
 0x965   :  { %1987 = vrot.lane.b32.xlu1 %v1986_v37, %s4117_s5 }
 0x9d7   :  { %v1988_v51 = vpop.permute.xlu1 %1987 }
 0x9d8   :  { %3665 = vmatmul.mubr.msk.f32.vlgmr.msra.gmra.mrb[12].mxu1 %vm812_vm7, %v1988_v51 }
 0x9d9   :  { %3686 = vmatprep.mubr.msk.f32.mxu1 %vm4115_vm5, %v4116_v29 }
 0xaab   :  { %v2057_v53 = vpop.f32.mrb[12].mxu1 }
 0xaac   :  { %v2062_v54 = vrot.slane %v2057_v53, 1  ;;  %v2065_v55 = vadd.f32 %v2057_v53, %v1983_v52  ;;  %v3666_v56 = vpop.f32.mrb[13].mxu1 }
 0xaae   :  { %v2066_v58 = vadd.f32 %v2062_v54, %v1984_v57  ;;  %3944 = vtanh.f32 %v2065_v55  ;;  %v3340_v61 = vmul.f32 -1.442695, %v2065_v55 }
 0xab0   :  { %3946 = vtanh.f32 %v2066_v58  ;;  %v3341_v62 = vmul.f32 -1.442695, %v2066_v58 }
 0xab1   :  { %3948 = vpow2.f32 %v3340_v61 }
 0xab2   :  { %3950 = vpow2.f32 %v3341_v62 }
 0xab8   :  { %v3945_v59 = vpop.eup %3944 }
 0xab9   :  { %2085 = vrot.lane.b32.xlu1 %v3945_v59, %s4118_s17  ;;  %v2271_v59 = vld [vmem:[%s4830_s18] sm:$0xff] }
 0xaba   :  { %v3947_v60 = vpop.eup %3946 }
 0xabb   :  { %2087 = vrot.lane.b32.xlu0 %v3947_v60, %s4118_s17  ;;  %v3949_v63 = vpop.eup %3948 }
 0xabc   :  { %v3951_v0 = vpop.eup %3950  ;;  %v2073_v1 = vadd.f32 1.0, %v3949_v63 }
 0xabd   :  { %v2074_v2 = vadd.f32 1.0, %v3951_v0 }
 0xabe   :  { %3952 = vrcp.f32 %v2073_v1 }
 0xabf   :  { %3954 = vrcp.f32 %v2074_v2 }
 0xac8   :  { %v3953_v3 = vpop.eup %3952 }
 0xac9   :  { %v3955_v6 = vpop.eup %3954  ;;  %v2081_v9 = vmul.f32 %v3953_v3, %v1959_v34 }
 0xaca   :  { %v2082_v13 = vmul.f32 %v3955_v6, %v1960_v40 }
 0xb2b   :  { %v2086_v4 = vpop.permute.xlu1 %2085 }
 0xb2c   :  { %v2091_v5 = vmul.f32 %v3953_v3, %v2086_v4 }
 0xb2d   :  { %v2088_v7 = vpop.permute.xlu0 %2087 }
 0xb2e   :  { %2095 = vrot.lane.b32.xlu1 %v2091_v5, %s4117_s5  ;;  %v2092_v8 = vmul.f32 %v3955_v6, %v2088_v7 }
 0xb30   :  { %2097 = vrot.lane.b32.xlu0 %v2092_v8, %s4117_s5 }
 0xba0   :  { %v2096_v11 = vpop.permute.xlu1 %2095 }
 0xba1   :  { %v2101_v12 = vadd.f32 %v2096_v11, %v2081_v9  ;;  %v2267_v9 = vld [vmem:[%s4831_s19] sm:$0xff]  ;;  %v2268_v11 = vld [vmem:[%s4831_s19 + $0x8] sm:$0xff] }
 0xba2   :  { %v2098_v14 = vpop.permute.xlu0 %2097 }
 0xba3   :  { %3956 = vtanh.f32 %v2101_v12  ;;  %v2102_v44 = vadd.f32 %v2098_v14, %v2082_v13  ;;  %v4677_v13 = vpack.c.bf16 %v2268_v11, %v2267_v9  ;;  %v2269_v14 = vld [vmem:[%s4831_s19 + $0x10] sm:$0xff] }
 0xba5   :  { %3958 = vtanh.f32 %v2102_v44 }
 0xbad   :  { %v3957_v15 = vpop.eup %3956 }
 0xbae   :  { %2107 = vrot.lane.b32.xlu1 %v3957_v15, %s4118_s17 }
 0xbaf   :  { %v3959_v16 = vpop.eup %3958 }
 0xbb0   :  { %2109 = vrot.lane.b32.xlu0 %v3959_v16, %s4118_s17 }
 0xc20   :  { %v2108_v17 = vpop.permute.xlu1 %2107 }
 0xc21   :  { %v2113_v20 = vmul.f32 %v3953_v3, %v2108_v17  ;;  %v3348_v17 = vld [vmem:[%s4819_s7 + $0x2] sm:$0x3] }
 0xc22   :  { %v2110_v18 = vpop.permute.xlu0 %2109 }
 0xc23   :  { %v2114_v21 = vmul.f32 %v3955_v6, %v2110_v18  ;;  %v3345_v18 = vld [vmem:[%s4832_s20] ss:$0 sm:$0xff] }
 0xc25   :  { %v2127_v41 = vrot.slane %v2114_v21, 7 }
 0xc27   :  { %v2128_v19 = vsel %vm1843_vm8, %v2127_v41, %v2113_v20 }
 0xc28   :  { %2129 = vrot.lane.b32.xlu0 %v2128_v19, %s4117_s5 }
 0xc9a   :  { %v2130_v31 = vpop.permute.xlu0 %2129 }
 0xc9b   :  { %3676 = vmatmul.mubr.msk.f32.vlgmr.msra.gmra.mrb[12].mxu0 %vm812_vm7, %v2130_v31 }
 0xc9c   :  { %3697 = vmatprep.mubr.msk.f32.mxu0 %vm4115_vm5, %v4116_v29 }
 0xd6e   :  { %v2199_v23 = vpop.f32.mrb[12].mxu0 }
 0xd6f   :  { %v2204_v24 = vrot.slane %v2199_v23, 1  ;;  %v2207_v25 = vadd.f32 %v2199_v23, %v2125_v22  ;;  %v3677_v27 = vpop.f32.mrb[13].mxu0 }
 0xd71   :  { %v2208_v32 = vadd.f32 %v2204_v24, %v2126_v28  ;;  %3960 = vtanh.f32 %v2207_v25  ;;  %v3343_v35 = vmul.f32 -1.442695, %v2207_v25 }
 0xd73   :  { %3962 = vtanh.f32 %v2208_v32  ;;  %v3344_v38 = vmul.f32 -1.442695, %v2208_v32 }
 0xd74   :  { %3964 = vpow2.f32 %v3343_v35 }
 0xd75   :  { %3966 = vpow2.f32 %v3344_v38 }
 0xd7b   :  { %v3961_v30 = vpop.eup %3960 }
 0xd7c   :  { %2227 = vrot.lane.b32.xlu0 %v3961_v30, %s4118_s17 }
 0xd7d   :  { %v3963_v33 = vpop.eup %3962 }
 0xd7e   :  { %2229 = vrot.lane.b32.xlu1 %v3963_v33, %s4118_s17  ;;  %v3965_v34 = vpop.eup %3964  ;;  %v3349_v33 = vld [vmem:[%s4820_s8 + $0x2] sm:$0x3] }
 0xd7f   :  { %v3967_v36 = vpop.eup %3966  ;;  %v2215_v39 = vadd.f32 1.0, %v3965_v34  ;;  %v2533_v34 = vrot.slane %v3349_v33, 1 }
 0xd80   :  { %v2216_v40 = vadd.f32 1.0, %v3967_v36 }
 0xd81   :  { %3968 = vrcp.f32 %v2215_v39 }
 0xd82   :  { %3970 = vrcp.f32 %v2216_v40 }
 0xd8b   :  { %v3969_v43 = vpop.eup %3968 }
 0xd8c   :  { %v3971_v47 = vpop.eup %3970  ;;  %v2223_v51 = vmul.f32 %v3969_v43, %v2101_v12 }
 0xd8d   :  { %v2224_v54 = vmul.f32 %v3971_v47, %v2102_v44  ;;  %v2270_v44 = vld [vmem:[%s4831_s19 + $0x18] sm:$0xff]  ;;  %s3239_s19 = sshll.u32 %s4119_s0, 4  ;;  %s3240_s19 = int_to_ptr.vmem [resolvable:$true] %s3239_s19 }
 0xd8e   :  { %v4691_v16 = vpack.c.bf16 %v2270_v44, %v2269_v14  ;;  %p4089_p3 = scmp.lt.s32.totalorder %s3240_s19, %s3240_s19 }
 0xdee   :  { %v2228_v45 = vpop.permute.xlu0 %2227 }
 0xdef   :  { %v2233_v46 = vmul.f32 %v3969_v43, %v2228_v45 }
 0xdf0   :  { %v2230_v50 = vpop.permute.xlu1 %2229 }
 0xdf1   :  { %2237 = vrot.lane.b32.xlu0 %v2233_v46, %s4117_s5  ;;  %v2234_v37 = vmul.f32 %v3971_v47, %v2230_v50 }
 0xdf3   :  { %2239 = vrot.lane.b32.xlu1 %v2234_v37, %s4117_s5 }
 0xe63   :  { %v2238_v52 = vpop.permute.xlu0 %2237 }
 0xe64   :  { %v2243_v53 = vadd.f32 %v2238_v52, %v2223_v51 }
 0xe65   :  { %v2240_v55 = vpop.permute.xlu1 %2239 }
 0xe66   :  { %3972 = vtanh.f32 %v2243_v53  ;;  %v2244_v56 = vadd.f32 %v2240_v55, %v2224_v54 }
 0xe68   :  { %3974 = vtanh.f32 %v2244_v56 }
 0xe70   :  { %v3973_v57 = vpop.eup %3972 }
 0xe71   :  { %2249 = vrot.lane.b32.xlu0 %v3973_v57, %s4118_s17 }
 0xe72   :  { %v3975_v58 = vpop.eup %3974 }
 0xe73   :  { %2251 = vrot.lane.b32.xlu1 %v3975_v58, %s4118_s17 }
 0xe75   :  { %1977 = vrot.lane.b32.xlu0 %v4607_v48, %s4117_s5  ;;  %v2272_v48 = vld [vmem:[%s4830_s18 + $0x8] sm:$0xff] }
 0xe76   :  { %v3828_v60 = vpack.c.bf16 %v2272_v48, %v2271_v59 }
 0xe77   :  { %1833 = vrot.lane.b32.xlu1 %v4586_v42, %s4117_s5  ;;  %v2273_v42 = vld [vmem:[%s4830_s18 + $0x10] sm:$0xff] }
 0xe78   :  { %3835 = vmatpush3.bf16.msra.mxu0 %v3828_v60  ;;  %3829 = vmatpush3.bf16.msra.mxu1 %v3828_v60 }
 0xe79   :  { %1975 = vrot.lane.b32.xlu0 %v4609_v49, %s4117_s5  ;;  %3836 = vmatprep.subr.bf16.mxu0 %v4114_v26 }
 0xe7a   :  { %3830 = vmatprep.subr.bf16.mxu1 %v4114_v26 }
 0xe7b   :  { %2119 = vrot.lane.b32.xlu1 %v2114_v21, %s4117_s5 }
 0xe7f   :  { %1831 = vrot.lane.b32.xlu1 %v4589_v10, %s4117_s5  ;;  %v2274_v10 = vld [vmem:[%s4830_s18 + $0x18] sm:$0xff] }
 0xe80   :  { %v3831_v49 = vpack.c.bf16 %v2274_v10, %v2273_v42 }
 0xe82   :  { %3838 = vmatpush3.bf16.msra.mxu0 %v3831_v49  ;;  %3832 = vmatpush3.bf16.msra.mxu1 %v3831_v49 }
 0xe83   :  { %2117 = vrot.lane.b32.xlu1 %v2113_v20, %s4117_s5  ;;  %3839 = vmatprep.subr.bf16.mxu1 %v4114_v26 }
 0xe84   :  { %3845 = vmatprep.subr.bf16.mxu0 %v4114_v26 }
 0xee3   :  { %v2250_v61 = vpop.permute.xlu0 %2249 }
 0xee4   :  { %v2255_v2 = vmul.f32 %v3969_v43, %v2250_v61 }
 0xee5   :  { %v2252_v62 = vpop.permute.xlu1 %2251 }
 0xee6   :  { %v2256_v63 = vmul.f32 %v3971_v47, %v2252_v62 }
 0xee7   :  { %v1978_v0 = vpop.permute.xlu0 %1977 }
 0xee8   :  { %1982 = vst.msk [vmem:[#allocation5 + $0x5] sm:$0x1] %vm1837_vm9, %v1978_v0  ;;  %2261 = vrot.lane.b32.xlu0 %v2256_v63, %s4117_s5 }
 0xee9   :  { %v1834_v1 = vpop.permute.xlu1 %1833 }
 0xeea   :  { %1839 = vst.msk [vmem:[#allocation5 + $0x4] sm:$0x1] %vm1837_vm9, %v1834_v1 }
 0xeeb   :  { %v1976_v3 = vpop.permute.xlu0 %1975 }
 0xeec   :  { %1981 = vst.msk [vmem:[#allocation5 + $0x1] sm:$0x1] %vm1837_vm9, %v1976_v3  ;;  %2259 = vrot.lane.b32.xlu0 %v2255_v2, %s4117_s5 }
 0xeed   :  { %v2120_v4 = vpop.permute.xlu1 %2119 }
 0xeee   :  { %2124 = vst.msk [vmem:[#allocation5 + $0x6] sm:$0x1] %vm1837_vm9, %v2120_v4 }
 0xef1   :  { %v1832_v5 = vpop.permute.xlu1 %1831 }
 0xef2   :  { %1838 = vst.msk [vmem:[#allocation5] sm:$0x1] %vm1837_vm9, %v1832_v5 }
 0xef5   :  { %v2118_v6 = vpop.permute.xlu1 %2117 }
 0xef6   :  { %2123 = vst.msk [vmem:[#allocation5 + $0x2] sm:$0x1] %vm1837_vm9, %v2118_v6 }
 0xf5a   :  { %v2262_v7 = vpop.permute.xlu0 %2261 }
 0xf5b   :  { %2266 = vst.msk [vmem:[#allocation5 + $0x7] sm:$0x1] %vm1837_vm9, %v2262_v7 }
 0xf5e   :  { %v2260_v8 = vpop.permute.xlu0 %2259 }
 0xf5f   :  { %2265 = vst.msk [vmem:[#allocation5 + $0x3] sm:$0x1] %vm1837_vm9, %v2260_v8 }
 0xf62   :  { %v2358_v12 = vld [vmem:[#allocation5 + $0x4] sm:$0xf] }
 0xf63   :  { %3698 = vmatmul.mubr.msk.f32.vlgmr.msra.gmra.mrb[14].mxu0 %vm812_vm7, %v2358_v12 }
 0xf64   :  { %3847 = vmatpush3.bf16.msra.mxu0 %v4677_v13  ;;  %3719 = vmatprep.mubr.msk.f32.mxu0 %vm4115_vm5, %v4116_v29 }
 0xf65   :  { %3848 = vmatprep.subr.bf16.mxu0 %v4114_v26 }
 0xf66   :  { %v2276_v15 = vld [vmem:[#allocation5] sm:$0xf] }
 0xf67   :  { %3687 = vmatmul.mubr.msk.f32.vlgmr.msra.gmra.mrb[14].mxu1 %vm812_vm7, %v2276_v15 }
 0xf68   :  { %3841 = vmatpush3.bf16.msra.mxu1 %v4677_v13  ;;  %3708 = vmatprep.mubr.msk.f32.mxu1 %vm4115_vm5, %v4116_v29 }
 0xf69   :  { %3842 = vmatprep.subr.bf16.mxu1 %v4114_v26  ;;  %3850 = vmatpush3.bf16.msra.mxu0 %v4691_v16 }
 0xf6a   :  { %3857 = vmatprep.subr.bf16.mxu0 %v4114_v26 }
 0xf6c   :  { %3844 = vmatpush3.bf16.msra.mxu1 %v4691_v16 }
 0xf6d   :  { %3851 = vmatprep.subr.bf16.mxu1 %v4114_v26 }
 0xf6f   :  { %3709 = vmatmul.mubr.msk.f32.vlgmr.msra.gmra.mrb[16].mxu1 %vm812_vm7, %v3348_v17 }
 0xf70   :  { %3853 = vmatpush3.bf16.msra.mxu1 %v4677_v13  ;;  %3730 = vmatprep.mubr.msk.f32.mxu1 %vm4115_vm5, %v4116_v29 }
 0xf71   :  { %3854 = vmatprep.subr.bf16.mxu1 %v4114_v26 }
 0xf74   :  { %3856 = vmatpush3.bf16.msra.mxu1 %v4691_v16 }
 0xf75   :  { %3863 = vmatprep.subr.bf16.mxu1 %v4114_v26 }
0x1036   :  { %v2428_v21 = vpop.f32.mrb[14].mxu0 }
0x1037   :  { %v2429_v20 = vadd.f32 %v3345_v18, %v2428_v21  ;;  %v3699_v41 = vpop.f32.mrb[15].mxu0 }
0x1039   :  { %2432 = vst [vmem:[#allocation4 + $0x4] sm:$0xf] %v2429_v20 }
0x103a   :  { %v2352_v19 = vpop.f32.mrb[14].mxu1 }
0x103b   :  { %v2353_v31 = vadd.f32 %v3345_v18, %v2352_v19  ;;  %v3688_v22 = vpop.f32.mrb[15].mxu1 }
0x103d   :  { %2356 = vst [vmem:[#allocation4] sm:$0xf] %v2353_v31 }
0x1040   :  { %v2438_v28 = vld [vmem:[#allocation4 + $0x4] sm:$0x1]  ;;  %v2575_v8 = vld [vmem:[#allocation4 + $0x5] sm:$0x1] }
0x1042   :  { %v2508_v23 = vpop.f32.mrb[16].mxu1 }
0x1043   :  { %v2513_v24 = vrot.slane %v2508_v23, 1  ;;  %v3710_v25 = vpop.f32.mrb[17].mxu1 }
0x1044   :  { %v2437_v27 = vld [vmem:[#allocation4] sm:$0x1]  ;;  %v2574_v3 = vld [vmem:[#allocation4 + $0x1] sm:$0x1] }
0x1045   :  { %v2516_v32 = vadd.f32 %v2508_v23, %v2437_v27  ;;  %v2517_v30 = vadd.f32 %v2513_v24, %v2438_v28 }
0x1047   :  { %3976 = vtanh.f32 %v2516_v32  ;;  %v3351_v36 = vmul.f32 -1.442695, %v2516_v32  ;;  %v3352_v39 = vmul.f32 -1.442695, %v2517_v30 }
0x1048   :  { %3978 = vtanh.f32 %v2517_v30 }
0x1049   :  { %3980 = vpow2.f32 %v3351_v36 }
0x104a   :  { %3982 = vpow2.f32 %v3352_v39 }
0x1051   :  { %v3977_v35 = vpop.eup %3976 }
0x1052   :  { %v3979_v38 = vpop.eup %3978  ;;  %2544 = vrot.lane.b32.xlu0 %v3977_v35, %s4118_s17 }
0x1053   :  { %2546 = vrot.lane.b32.xlu1 %v3979_v38, %s4118_s17  ;;  %v3981_v40 = vpop.eup %3980 }
0x1054   :  { %v3983_v43 = vpop.eup %3982  ;;  %v2524_v45 = vadd.f32 1.0, %v3981_v40 }
0x1055   :  { %v2525_v46 = vadd.f32 1.0, %v3983_v43  ;;  %v2708_v43 = vld [vmem:[#allocation4 + $0x2] sm:$0x1] }
0x1056   :  { %2534 = vrot.lane.b32.xlu0 %v3349_v33, %s4117_s5  ;;  %3984 = vrcp.f32 %v2524_v45 }
0x1057   :  { %2536 = vrot.lane.b32.xlu1 %v2533_v34, %s4117_s5  ;;  %3986 = vrcp.f32 %v2525_v46 }
0x1060   :  { %v3985_v47 = vpop.eup %3984 }
0x1061   :  { %v3987_v37 = vpop.eup %3986 }
0x10c4   :  { %v2545_v50 = vpop.permute.xlu0 %2544 }
0x10c5   :  { %v2547_v51 = vpop.permute.xlu1 %2546  ;;  %v2550_v52 = vmul.f32 %v3985_v47, %v2545_v50 }
0x10c6   :  { %v2551_v53 = vmul.f32 %v3987_v37, %v2547_v51 }
0x10c7   :  { %2554 = vrot.lane.b32.xlu0 %v2550_v52, %s4117_s5 }
0x10c8   :  { %2556 = vrot.lane.b32.xlu1 %v2551_v53, %s4117_s5  ;;  %v2535_v54 = vpop.permute.xlu0 %2534 }
0x10c9   :  { %v2537_v55 = vpop.permute.xlu1 %2536  ;;  %v2540_v56 = vmul.f32 %v3985_v47, %v2535_v54 }
0x10ca   :  { %v2541_v57 = vmul.f32 %v3987_v37, %v2537_v55 }
0x1139   :  { %v2555_v58 = vpop.permute.xlu0 %2554 }
0x113a   :  { %v2557_v59 = vpop.permute.xlu1 %2556  ;;  %v2560_v48 = vadd.f32 %v2555_v58, %v2540_v56 }
0x113b   :  { %v2561_v60 = vadd.f32 %v2557_v59, %v2541_v57 }
0x113c   :  { %3988 = vtanh.f32 %v2560_v48 }
0x113d   :  { %3990 = vtanh.f32 %v2561_v60 }
0x1146   :  { %v3989_v42 = vpop.eup %3988 }
0x1147   :  { %v3991_v10 = vpop.eup %3990  ;;  %2566 = vrot.lane.b32.xlu0 %v3989_v42, %s4118_s17 }
0x1148   :  { %2568 = vrot.lane.b32.xlu1 %v3991_v10, %s4118_s17 }
0x11b9   :  { %v2567_v49 = vpop.permute.xlu0 %2566 }
0x11ba   :  { %v2569_v61 = vpop.permute.xlu1 %2568  ;;  %v2572_v63 = vmul.f32 %v3985_v47, %v2567_v49 }
0x11bb   :  { %v2573_v62 = vmul.f32 %v3987_v37, %v2569_v61  ;;  %v2709_v37 = vld [vmem:[#allocation4 + $0x6] sm:$0x1] }
0x11bd   :  { %v2578_v0 = vrot.slane %v2573_v62, 7 }
0x11bf   :  { %v2579_v1 = vsel %vm1843_vm8, %v2578_v0, %v2572_v63 }
0x11c0   :  { %2580 = vrot.lane.b32.xlu1 %v2579_v1, %s4117_s5 }
0x1232   :  { %v2581_v2 = vpop.permute.xlu1 %2580 }
0x1233   :  { %3720 = vmatmul.mubr.msk.f32.vlgmr.msra.gmra.mrb[16].mxu0 %vm812_vm7, %v2581_v2 }
0x1234   :  { %3859 = vmatpush3.bf16.msra.mxu0 %v4677_v13  ;;  %3741 = vmatprep.mubr.msk.f32.mxu0 %vm4115_vm5, %v4116_v29 }
0x1235   :  { %3860 = vmatprep.subr.bf16.mxu0 %v4114_v26 }
0x1238   :  { %3862 = vmatpush3.bf16.msra.mxu0 %v4691_v16 }
0x1239   :  { %3869 = vmatprep.subr.bf16.mxu0 %v4114_v26 }
0x1306   :  { %v2650_v4 = vpop.f32.mrb[16].mxu0 }
0x1307   :  { %v2655_v5 = vrot.slane %v2650_v4, 1  ;;  %v2658_v6 = vadd.f32 %v2650_v4, %v2574_v3  ;;  %v3721_v7 = vpop.f32.mrb[17].mxu0 }
0x1309   :  { %v2659_v9 = vadd.f32 %v2655_v5, %v2575_v8  ;;  %3992 = vtanh.f32 %v2658_v6  ;;  %v3354_v13 = vmul.f32 -1.442695, %v2658_v6 }
0x130b   :  { %3994 = vtanh.f32 %v2659_v9  ;;  %v3355_v14 = vmul.f32 -1.442695, %v2659_v9 }
0x130c   :  { %3996 = vpow2.f32 %v3354_v13 }
0x130d   :  { %3998 = vpow2.f32 %v3355_v14  ;;  %v2842_v14 = vld [vmem:[#allocation4 + $0x3] sm:$0x1] }
0x1313   :  { %v3993_v11 = vpop.eup %3992 }
0x1314   :  { %2678 = vrot.lane.b32.xlu1 %v3993_v11, %s4118_s17 }
0x1315   :  { %v3995_v12 = vpop.eup %3994 }
0x1316   :  { %2680 = vrot.lane.b32.xlu0 %v3995_v12, %s4118_s17  ;;  %v3997_v44 = vpop.eup %3996 }
0x1317   :  { %v3999_v15 = vpop.eup %3998  ;;  %v2666_v16 = vadd.f32 1.0, %v3997_v44 }
0x1318   :  { %v2667_v17 = vadd.f32 1.0, %v3999_v15 }
0x1319   :  { %4000 = vrcp.f32 %v2666_v16 }
0x131a   :  { %4002 = vrcp.f32 %v2667_v17 }
0x1323   :  { %v4001_v18 = vpop.eup %4000 }
0x1324   :  { %v4003_v41 = vpop.eup %4002  ;;  %v2674_v22 = vmul.f32 %v4001_v18, %v2560_v48 }
0x1325   :  { %v2675_v25 = vmul.f32 %v4003_v41, %v2561_v60 }
0x1386   :  { %v2679_v21 = vpop.permute.xlu1 %2678 }
0x1387   :  { %v2684_v20 = vmul.f32 %v4001_v18, %v2679_v21 }
0x1388   :  { %v2681_v19 = vpop.permute.xlu0 %2680 }
0x1389   :  { %2688 = vrot.lane.b32.xlu1 %v2684_v20, %s4117_s5  ;;  %v2685_v31 = vmul.f32 %v4003_v41, %v2681_v19 }
0x138b   :  { %2690 = vrot.lane.b32.xlu0 %v2685_v31, %s4117_s5 }
0x13fb   :  { %v2689_v23 = vpop.permute.xlu1 %2688 }
0x13fc   :  { %v2694_v24 = vadd.f32 %v2689_v23, %v2674_v22 }
0x13fd   :  { %v2691_v27 = vpop.permute.xlu0 %2690 }
0x13fe   :  { %4004 = vtanh.f32 %v2694_v24  ;;  %v2695_v28 = vadd.f32 %v2691_v27, %v2675_v25 }
0x1400   :  { %4006 = vtanh.f32 %v2695_v28 }
0x1408   :  { %v4005_v32 = vpop.eup %4004 }
0x1409   :  { %2700 = vrot.lane.b32.xlu1 %v4005_v32, %s4118_s17 }
0x140a   :  { %v4007_v30 = vpop.eup %4006 }
0x140b   :  { %2702 = vrot.lane.b32.xlu0 %v4007_v30, %s4118_s17 }
0x147b   :  { %v2701_v33 = vpop.permute.xlu1 %2700 }
0x147c   :  { %v2706_v34 = vmul.f32 %v4001_v18, %v2701_v33  ;;  %v2843_v18 = vld [vmem:[#allocation4 + $0x7] sm:$0x1] }
0x147d   :  { %v2703_v35 = vpop.permute.xlu0 %2702 }
0x147e   :  { %v2707_v38 = vmul.f32 %v4003_v41, %v2703_v35 }
0x1480   :  { %v2712_v36 = vrot.slane %v2707_v38, 7 }
0x1482   :  { %v2713_v39 = vsel %vm1843_vm8, %v2712_v36, %v2706_v34 }
0x1483   :  { %2714 = vrot.lane.b32.xlu0 %v2713_v39, %s4117_s5 }
0x14f5   :  { %v2715_v40 = vpop.permute.xlu0 %2714 }
0x14f6   :  { %3731 = vmatmul.mubr.msk.f32.vlgmr.msra.gmra.mrb[18].mxu1 %vm812_vm7, %v2715_v40 }
0x14f7   :  { %3752 = vmatprep.mubr.msk.f32.mxu1 %vm4115_vm5, %v4116_v29 }
0x15c9   :  { %v2784_v45 = vpop.f32.mrb[18].mxu1 }
0x15ca   :  { %v2789_v46 = vrot.slane %v2784_v45, 1  ;;  %v2792_v47 = vadd.f32 %v2784_v45, %v2708_v43  ;;  %v3732_v50 = vpop.f32.mrb[19].mxu1  ;;  %v2976_v45 = vld [vmem:[%s4821_s9] sm:$0xff] }
0x15cc   :  { %v2793_v51 = vadd.f32 %v2789_v46, %v2709_v37  ;;  %4008 = vtanh.f32 %v2792_v47  ;;  %v3357_v54 = vmul.f32 -1.442695, %v2792_v47  ;;  %v2977_v46 = vld [vmem:[%s4821_s9 + $0x8] sm:$0xff]  ;;  %v2978_v47 = vld [vmem:[%s4821_s9 + $0x10] sm:$0xff]  ;;  %v2979_v37 = vld [vmem:[%s4821_s9 + $0x18] sm:$0xff] }
0x15cd   :  { %v3864_v50 = vpack.c.bf16 %v2977_v46, %v2976_v45 }
0x15ce   :  { %4010 = vtanh.f32 %v2793_v51  ;;  %v3358_v55 = vmul.f32 -1.442695, %v2793_v51  ;;  %v3867_v51 = vpack.c.bf16 %v2979_v37, %v2978_v47 }
0x15cf   :  { %4012 = vpow2.f32 %v3357_v54  ;;  %3865 = vmatpush3.bf16.msra.mxu1 %v3864_v50 }
0x15d0   :  { %4014 = vpow2.f32 %v3358_v55  ;;  %3866 = vmatprep.subr.bf16.mxu1 %v4114_v26  ;;  %v3066_v26 = vld [vmem:[%s4823_s11] sm:$0xff] }
0x15d3   :  { %3868 = vmatpush3.bf16.msra.mxu1 %v3867_v51 }
0x15d6   :  { %v4009_v52 = vpop.eup %4008 }
0x15d7   :  { %2812 = vrot.lane.b32.xlu0 %v4009_v52, %s4118_s17 }
0x15d8   :  { %v4011_v53 = vpop.eup %4010 }
0x15d9   :  { %2814 = vrot.lane.b32.xlu1 %v4011_v53, %s4118_s17  ;;  %v4013_v56 = vpop.eup %4012 }
0x15da   :  { %v4015_v57 = vpop.eup %4014  ;;  %v2800_v58 = vadd.f32 1.0, %v4013_v56 }
0x15db   :  { %v2801_v59 = vadd.f32 1.0, %v4015_v57 }
0x15dc   :  { %4016 = vrcp.f32 %v2800_v58 }
0x15dd   :  { %4018 = vrcp.f32 %v2801_v59 }
0x15e6   :  { %v4017_v48 = vpop.eup %4016 }
0x15e7   :  { %v4019_v10 = vpop.eup %4018  ;;  %v2808_v62 = vmul.f32 %v4017_v48, %v2694_v24 }
0x15e8   :  { %v2809_v1 = vmul.f32 %v4019_v10, %v2695_v28 }
0x1649   :  { %v2813_v60 = vpop.permute.xlu0 %2812 }
0x164a   :  { %v2818_v42 = vmul.f32 %v4017_v48, %v2813_v60  ;;  %v3067_v60 = vld [vmem:[%s4823_s11 + $0x8] sm:$0xff] }
0x164b   :  { %v2815_v49 = vpop.permute.xlu1 %2814 }
0x164c   :  { %2822 = vrot.lane.b32.xlu0 %v2818_v42, %s4117_s5  ;;  %v2819_v61 = vmul.f32 %v4019_v10, %v2815_v49  ;;  %v3870_v42 = vpack.c.bf16 %v3067_v60, %v3066_v26 }
0x164e   :  { %2824 = vrot.lane.b32.xlu1 %v2819_v61, %s4117_s5 }
0x16be   :  { %v2823_v63 = vpop.permute.xlu0 %2822 }
0x16bf   :  { %v2828_v0 = vadd.f32 %v2823_v63, %v2808_v62 }
0x16c0   :  { %v2825_v2 = vpop.permute.xlu1 %2824 }
0x16c1   :  { %4020 = vtanh.f32 %v2828_v0  ;;  %v2829_v3 = vadd.f32 %v2825_v2, %v2809_v1  ;;  %v3364_v1 = vld [vmem:[%s4824_s12] ss:$0 sm:$0xff] }
0x16c3   :  { %4022 = vtanh.f32 %v2829_v3 }
0x16cb   :  { %v4021_v4 = vpop.eup %4020 }
0x16cc   :  { %2834 = vrot.lane.b32.xlu0 %v4021_v4, %s4118_s17 }
0x16cd   :  { %v4023_v5 = vpop.eup %4022 }
0x16ce   :  { %2836 = vrot.lane.b32.xlu1 %v4023_v5, %s4118_s17 }
0x173e   :  { %v2835_v6 = vpop.permute.xlu0 %2834 }
0x173f   :  { %v2840_v9 = vmul.f32 %v4017_v48, %v2835_v6  ;;  %v3366_v6 = vld [vmem:[%s4826_s14] ss:$0 sm:$0xff] }
0x1740   :  { %v2837_v7 = vpop.permute.xlu1 %2836 }
0x1741   :  { %v2841_v8 = vmul.f32 %v4019_v10, %v2837_v7  ;;  %v3362_v10 = vld [vmem:[%s4822_s10] ss:$0 sm:$0xff] }
0x1743   :  { %v2846_v11 = vrot.slane %v2841_v8, 7 }
0x1745   :  { %v2847_v12 = vsel %vm1843_vm8, %v2846_v11, %v2840_v9 }
0x1746   :  { %2848 = vrot.lane.b32.xlu1 %v2847_v12, %s4117_s5 }
0x17b8   :  { %v2849_v13 = vpop.permute.xlu1 %2848 }
0x17b9   :  { %3742 = vmatmul.mubr.msk.f32.vlgmr.msra.gmra.mrb[18].mxu0 %vm812_vm7, %v2849_v13 }
0x17ba   :  { %3759 = vmatprep.mubr.msk.f32.mxu0 %vm4115_vm5, %v4116_v29  ;;  %3871 = vmatpush3.bf16.msra.mxu0 %v3870_v42 }
0x17bb   :  { %3762 = vmatprep.subr.mxu0 %v4116_v29 }
0x188c   :  { %v2918_v44 = vpop.f32.mrb[18].mxu0 }
0x188d   :  { %v2923_v15 = vrot.slane %v2918_v44, 1  ;;  %v2926_v16 = vadd.f32 %v2918_v44, %v2842_v14  ;;  %v3743_v17 = vpop.f32.mrb[19].mxu0 }
0x188f   :  { %v2927_v21 = vadd.f32 %v2923_v15, %v2843_v18  ;;  %4024 = vtanh.f32 %v2926_v16  ;;  %v3360_v19 = vmul.f32 -1.442695, %v2926_v16 }
0x1891   :  { %4026 = vtanh.f32 %v2927_v21  ;;  %v3361_v31 = vmul.f32 -1.442695, %v2927_v21 }
0x1892   :  { %4028 = vpow2.f32 %v3360_v19 }
0x1893   :  { %4030 = vpow2.f32 %v3361_v31 }
0x1899   :  { %v4025_v20 = vpop.eup %4024 }
0x189a   :  { %2946 = vrot.lane.b32.xlu1 %v4025_v20, %s4118_s17 }
0x189b   :  { %v4027_v41 = vpop.eup %4026 }
0x189c   :  { %2948 = vrot.lane.b32.xlu0 %v4027_v41, %s4118_s17  ;;  %v4029_v22 = vpop.eup %4028 }
0x189d   :  { %v4031_v23 = vpop.eup %4030  ;;  %v2934_v24 = vadd.f32 1.0, %v4029_v22 }
0x189e   :  { %v2935_v25 = vadd.f32 1.0, %v4031_v23 }
0x189f   :  { %4032 = vrcp.f32 %v2934_v24 }
0x18a0   :  { %4034 = vrcp.f32 %v2935_v25 }
0x18a9   :  { %v4033_v27 = vpop.eup %4032 }
0x18aa   :  { %v4035_v30 = vpop.eup %4034  ;;  %v2942_v38 = vmul.f32 %v4033_v27, %v2828_v0  ;;  %v3149_v0 = vld [vmem:[%s4825_s13] sm:$0xff]  ;;  %s4084_s13 = scalar_lea.vmem %s3240_s19, 32 }
0x18ab   :  { %v2943_v39 = vmul.f32 %v4035_v30, %v2829_v3  ;;  %p4085_p2 = scmp.ne.s32.totalorder %s3240_s19, %s4084_s13  ;;  %p4090_p4 = scmp.lt.s32.totalorder %s4084_s13, %s4084_s13 }
0x18ad   :  { %p4091_p5 = por %p4090_p4, %p4089_p3 }
0x18af   :  { %p4092_p6 = pnand %p4091_p5, %p4085_p2 }
0x190c   :  { %v2947_v28 = vpop.permute.xlu1 %2946 }
0x190d   :  { %v2952_v32 = vmul.f32 %v4033_v27, %v2947_v28 }
0x190e   :  { %v2949_v33 = vpop.permute.xlu0 %2948 }
0x190f   :  { %2956 = vrot.lane.b32.xlu1 %v2952_v32, %s4117_s5  ;;  %v2953_v35 = vmul.f32 %v4035_v30, %v2949_v33 }
0x1911   :  { %2958 = vrot.lane.b32.xlu0 %v2953_v35, %s4117_s5 }
0x1981   :  { %v2957_v34 = vpop.permute.xlu1 %2956 }
0x1982   :  { %v2962_v36 = vadd.f32 %v2957_v34, %v2942_v38 }
0x1983   :  { %v2959_v40 = vpop.permute.xlu0 %2958 }
0x1984   :  { %4036 = vtanh.f32 %v2962_v36  ;;  %v2963_v43 = vadd.f32 %v2959_v40, %v2943_v39 }
0x1986   :  { %4038 = vtanh.f32 %v2963_v43 }
0x198e   :  { %v4037_v52 = vpop.eup %4036 }
0x198f   :  { %2968 = vrot.lane.b32.xlu1 %v4037_v52, %s4118_s17 }
0x1990   :  { %v4039_v53 = vpop.eup %4038 }
0x1991   :  { %2970 = vrot.lane.b32.xlu0 %v4039_v53, %s4118_s17 }
0x1a01   :  { %v2969_v54 = vpop.permute.xlu1 %2968 }
0x1a02   :  { %v2974_v57 = vmul.f32 %v4033_v27, %v2969_v54 }
0x1a03   :  { %v2971_v55 = vpop.permute.xlu0 %2970 }
0x1a04   :  { %v2975_v56 = vmul.f32 %v4035_v30, %v2971_v55 }
0x1a06   :  { %v2989_v58 = vrot.slane %v2975_v56, 7 }
0x1a08   :  { %v2990_v59 = vsel %vm1843_vm8, %v2989_v58, %v2974_v57 }
0x1a09   :  { %2991 = vrot.lane.b32.xlu0 %v2990_v59, %s4117_s5 }
0x1a7b   :  { %v2992_v48 = vpop.permute.xlu0 %2991 }
0x1a7c   :  { %3753 = vmatmul.mubr.msk.f32.vlgmr.msra.gmra.mrb[20].mxu1 %vm812_vm7, %v2992_v48 }
0x1b4f   :  { %v3061_v49 = vpop.f32.mrb[20].mxu1 }
0x1b50   :  { %v3062_v61 = vadd.f32 %v3362_v10, %v3061_v49  ;;  %v3754_v62 = vpop.f32.mrb[21].mxu1 }
0x1b52   :  { %v3065_v63 = vmax.f32 %v3062_v61, 0.0 }
0x1b54   :  { %3760 = vmatmul.mubr.msk.f32.vlgmr.msra.gmra.mrb[20].mxu0 %vm515_vm4, %v3065_v63 }
0x1b55   :  { %3764 = vmatprep.mubr.msk.f32.mxu0 %vm4115_vm5, %v4116_v29  ;;  %3763 = vmatpush3.msra.mxu0 %v3149_v0 }
0x1c27   :  { %v3144_v2 = vpop.f32.mrb[20].mxu0 }
0x1c28   :  { %v3145_v3 = vadd.f32 %v3364_v1, %v3144_v2  ;;  %v3761_v4 = vpop.f32.mrb[21].mxu0 }
0x1c2a   :  { %v3148_v5 = vmax.f32 %v3145_v3, 0.0 }
0x1c2c   :  { %3765 = vmatmul.mubr.msk.f32.vlgmr.msra.gmra.mrb[22].mxu0 %vm3157_vm10, %v3148_v5 }
0x1cff   :  { %v3227_v29 = vpop.f32.mrb[22].mxu0 }
0x1d00   :  { %v3228_v7 = vadd.f32 %v3366_v6, %v3227_v29  ;;  %v3766_v8 = vpop.f32.mrb[23].mxu0 }
0x1d02   :  { %3232 = vst.msk [vmem:[#allocation11] sm:$0x3] %vm3231_vm11, %v3228_v7 }
0x1d03   :  { %4095 = shalt.err (!%p4092_p6)
}
0x1d04   :  { %s4096_s15 = scalar_lea.hbm %s4833_s21, 32 }
0x1d05   :  { %p4097_p7 = scmp.ne.s32.totalorder %s4833_s21, %s4096_s15  ;;  %p4100_p8 = scmp.lt.u32.totalorder %s4096_s15, %s4833_s21 }
0x1d07   :  { %p4102_p9 = pnand %p4100_p8, %p4097_p7 }
0x1d09   :  { %4105 = shalt.err (!%p4102_p9)
}
0x1d0a   :  { %3242 = dma.vmem_to_hbm [thread:$0]  %s3240_s19, 32, %s4833_s21, [#allocation8]  }
0x1d0b   :  { %4110 = dma.done.wait [#allocation8], 32  }
0x1d0c   :  { %4111 = vsyncadd [#allocation8], 4294967264 }
0x1d0d   :  { %3246 = vsyncpa [#allocation7], 1 }
0x1d0e   :  { %3247 = vsyncpa [#allocation10], 1 }
0x1d0f   :  { %3248 = vsyncpa [#allocation8], 1 }

</bundles_post_ra>
